<compile_context>
chip_gen: v6e
topology: v6e:2x2x1
jax: 0.10.0
libtpu: 0.0.40
codegen_flags: <defaults>
</compile_context>

<pallas_src>
import functools

import jax
import jax.numpy as jnp
from jax import lax
from jax.experimental import pallas as pl
from jax.experimental.pallas import tpu as pltpu

BN_EPS = 1e-5


# ----------------------------------------------------------------------------
# In-kernel helpers
# ----------------------------------------------------------------------------

def _conv3x3_rows(xp, w_ref, H, W, Cout):
    """xp: (H+2, W*Cin) H-padded packed rows.  w_ref: (3, W*Cin, W*Cout) banded
    weights (kx taps + W 'same' padding folded in).  Returns (H, W*Cout) f32."""
    acc = jnp.zeros((H, W * Cout), jnp.float32)
    for ky in range(3):                       # unrolled: 3 MXU matmuls, K = W*Cin
        acc = acc + jnp.dot(xp[ky:ky + H, :], w_ref[ky],
                            preferred_element_type=jnp.float32)
    return acc


def _tile_channel_stats(acc, sel, selT, count):
    """Per-channel sum and *centered* sum-of-squares for one (H, W*C) tile.
    sel: (W*C, C) selector, selT: (C, W*C).  Centering per tile keeps the
    cross-tile variance combine numerically safe."""
    s_row = jnp.sum(acc, axis=0, keepdims=True)                       # (1, W*C)
    s_c = jnp.dot(s_row, sel, preferred_element_type=jnp.float32)     # (1, C)
    mu_packed = jnp.dot(s_c * (1.0 / count), selT,
                        preferred_element_type=jnp.float32)           # (1, W*C)
    cen = acc - mu_packed
    q_row = jnp.sum(cen * cen, axis=0, keepdims=True)                 # (1, W*C)
    q_c = jnp.dot(q_row, sel, preferred_element_type=jnp.float32)     # (1, C)
    return s_c, q_c


# ----------------------------------------------------------------------------
# Kernels
# ----------------------------------------------------------------------------

def _conv1_kernel(x_ref, w_ref, sel_ref, selT_ref, h_ref, s_ref, q_ref,
                  *, H, W, Cin, Cout, cdtype):
    """conv1 for one image tile + partial BN1 statistics."""
    x = x_ref[0].astype(cdtype)                          # (H, W*Cin)
    zrow = jnp.zeros((1, W * Cin), cdtype)
    xp = jnp.concatenate([zrow, x, zrow], axis=0)        # H 'same' padding
    acc = _conv3x3_rows(xp, w_ref, H, W, Cout)           # f32 accumulation
    h_ref[0] = acc                                       # pre-BN conv1 output
    s_c, q_c = _tile_channel_stats(acc, sel_ref[...], selT_ref[...],
                                   float(H * W))
    s_ref[0] = s_c
    q_ref[0] = q_c


def _bn_relu_conv2_kernel(h_ref, sc_ref, sh_ref, w_ref, sel_ref, selT_ref,
                          o_ref, s_ref, q_ref, *, H, W, Cin, Cout, cdtype):
    """Fused BN1(scale/shift)+ReLU on conv1 output, then conv2 + BN2 stats."""
    act = jnp.maximum(h_ref[0] * sc_ref[...] + sh_ref[...], 0.0)   # f32 math
    act = act.astype(cdtype)                                       # MXU operand
    zrow = jnp.zeros((1, W * Cin), cdtype)
    ap = jnp.concatenate([zrow, act, zrow], axis=0)
    acc = _conv3x3_rows(ap, w_ref, H, W, Cout)
    o_ref[0] = acc                                       # pre-BN conv2 output
    s_c, q_c = _tile_channel_stats(acc, sel_ref[...], selT_ref[...],
                                   float(H * W))
    s_ref[0] = s_c
    q_ref[0] = q_c


def _bn_relu_kernel(h_ref, sc_ref, sh_ref, o_ref):
    """Final BN2(scale/shift) + ReLU, lane-dense store."""
    o_ref[0] = jnp.maximum(h_ref[0] * sc_ref[...] + sh_ref[...], 0.0)


# ----------------------------------------------------------------------------
# Wrapper-side helpers (tiny, O(C) / O(W*C) work)
# ----------------------------------------------------------------------------

def _banded_conv_weights(w_hwio, W):
    """(3, 3, Cin, Cout) HWIO -> (3, W*Cin, W*Cout).  The kx offsets and the
    W-direction 'same' zero padding are folded into the contraction, so the
    kernel needs no kx shifts and no W halo."""
    Cin, Cout = w_hwio.shape[2], w_hwio.shape[3]
    mats = []
    for ky in range(3):
        m = jnp.zeros((W * Cin, W * Cout), w_hwio.dtype)
        for kx in range(3):
            # output column x reads input column xi = x + kx - 1 -> shifted eye
            m = m + jnp.kron(jnp.eye(W, W, k=1 - kx, dtype=w_hwio.dtype),
                             w_hwio[ky, kx])
        mats.append(m)
    return jnp.stack(mats, axis=0)


def _channel_selector(W, C):
    """(W*C, C) 0/1 matrix mapping packed lane x*C + c -> channel c."""
    return jnp.tile(jnp.eye(C, dtype=jnp.float32), (W, 1))


def _bn_scale_shift(s, q, count, gamma, beta):
    """Combine per-tile (sum, centered ssq) -> fused BN scale/shift per channel.
    Chan's parallel-variance combine; biased variance (train-mode BatchNorm2d)."""
    total = s.shape[0] * count
    mean = jnp.sum(s, axis=0) / total                                # (1, C)
    tile_mean = s / count                                            # (N, 1, C)
    var = (jnp.sum(q, axis=0)
           + count * jnp.sum((tile_mean - mean) ** 2, axis=0)) / total
    scale = gamma.reshape(1, -1) * lax.rsqrt(var + BN_EPS)
    shift = beta.reshape(1, -1) - mean * scale
    return scale, shift


# ----------------------------------------------------------------------------
# Public entry point
# ----------------------------------------------------------------------------

def double_conv(x_nchw, params, *, compute_dtype=jnp.bfloat16):
    """DoubleConv forward.  x_nchw: (N, Cin, H, W) f32 -> (N, Cout, H, W) f32."""
    w1, b1, g1, be1, w2, b2, g2, be2 = params
    # b1/b2 are intentionally unused: training-mode BN subtracts the batch mean
    # right after the conv, so a per-channel constant cancels exactly.
    del b1, b2
    N, Cin, H, W = x_nchw.shape
    Cmid = w1.shape[-1]
    Cout = w2.shape[-1]
    count = H * W                     # elements per tile per channel

    # NCHW -> packed rows (N, H, W*Cin), channels fastest on the lane axis.
    x = jnp.transpose(x_nchw, (0, 2, 3, 1)).reshape(N, H, W * Cin)
    x = x.astype(compute_dtype)

    wb1 = _banded_conv_weights(w1, W).astype(compute_dtype)  # (3, W*Cin,  W*Cmid)
    wb2 = _banded_conv_weights(w2, W).astype(compute_dtype)  # (3, W*Cmid, W*Cout)
    sel1 = _channel_selector(W, Cmid)
    sel2 = _channel_selector(W, Cout)

    grid = (N,)   # independent image tiles -> "parallel" (v7x megacore sharding)
    cparams = pltpu.CompilerParams(
        dimension_semantics=("parallel",),
        vmem_limit_bytes=32 * 1024 * 1024,
    )

    # ---- stage 1: conv1 + partial BN1 stats --------------------------------
    h1, s1, q1 = pl.pallas_call(
        functools.partial(_conv1_kernel, H=H, W=W, Cin=Cin, Cout=Cmid,
                          cdtype=compute_dtype),
        grid=grid,
        in_specs=[
            pl.BlockSpec((1, H, W * Cin), lambda n: (n, 0, 0)),
            pl.BlockSpec((3, W * Cin, W * Cmid), lambda n: (0, 0, 0)),
            pl.BlockSpec((W * Cmid, Cmid), lambda n: (0, 0)),
            pl.BlockSpec((Cmid, W * Cmid), lambda n: (0, 0)),
        ],
        out_specs=(
            pl.BlockSpec((1, H, W * Cmid), lambda n: (n, 0, 0)),
            pl.BlockSpec((1, 1, Cmid), lambda n: (n, 0, 0)),
            pl.BlockSpec((1, 1, Cmid), lambda n: (n, 0, 0)),
        ),
        out_shape=(
            jax.ShapeDtypeStruct((N, H, W * Cmid), jnp.float32),
            jax.ShapeDtypeStruct((N, 1, Cmid), jnp.float32),
            jax.ShapeDtypeStruct((N, 1, Cmid), jnp.float32),
        ),
        compiler_params=cparams,
    )(x, wb1, sel1, sel1.T)

    scale1, shift1 = _bn_scale_shift(s1, q1, count, g1, be1)
    scale1p = jnp.tile(scale1, (1, W))          # packed (1, W*Cmid)
    shift1p = jnp.tile(shift1, (1, W))

    # ---- stage 2: fused BN1+ReLU -> conv2 + partial BN2 stats --------------
    h2, s2, q2 = pl.pallas_call(
        functools.partial(_bn_relu_conv2_kernel, H=H, W=W, Cin=Cmid, Cout=Cout,
                          cdtype=compute_dtype),
        grid=grid,
        in_specs=[
            pl.BlockSpec((1, H, W * Cmid), lambda n: (n, 0, 0)),
            pl.BlockSpec((1, W * Cmid), lambda n: (0, 0)),
            pl.BlockSpec((1, W * Cmid), lambda n: (0, 0)),
            pl.BlockSpec((3, W * Cmid, W * Cout), lambda n: (0, 0, 0)),
            pl.BlockSpec((W * Cout, Cout), lambda n: (0, 0)),
            pl.BlockSpec((Cout, W * Cout), lambda n: (0, 0)),
        ],
        out_specs=(
            pl.BlockSpec((1, H, W * Cout), lambda n: (n, 0, 0)),
            pl.BlockSpec((1, 1, Cout), lambda n: (n, 0, 0)),
            pl.BlockSpec((1, 1, Cout), lambda n: (n, 0, 0)),
        ),
        out_shape=(
            jax.ShapeDtypeStruct((N, H, W * Cout), jnp.float32),
            jax.ShapeDtypeStruct((N, 1, Cout), jnp.float32),
            jax.ShapeDtypeStruct((N, 1, Cout), jnp.float32),
        ),
        compiler_params=cparams,
    )(h1, scale1p, shift1p, wb2, sel2, sel2.T)

    scale2, shift2 = _bn_scale_shift(s2, q2, count, g2, be2)
    scale2p = jnp.tile(scale2, (1, W))
    shift2p = jnp.tile(shift2, (1, W))

    # ---- stage 3: BN2 + ReLU ------------------------------------------------
    y = pl.pallas_call(
        _bn_relu_kernel,
        grid=grid,
        in_specs=[
            pl.BlockSpec((1, H, W * Cout), lambda n: (n, 0, 0)),
            pl.BlockSpec((1, W * Cout), lambda n: (0, 0)),
            pl.BlockSpec((1, W * Cout), lambda n: (0, 0)),
        ],
        out_specs=pl.BlockSpec((1, H, W * Cout), lambda n: (n, 0, 0)),
        out_shape=jax.ShapeDtypeStruct((N, H, W * Cout), jnp.float32),
        compiler_params=cparams,
    )(h2, scale2p, shift2p)

    # packed rows -> NCHW (output-side layout change only).
    return jnp.transpose(y.reshape(N, H, W, Cout), (0, 3, 1, 2))


# ----------------------------------------------------------------------------
# Pure-JAX reference (same semantics, conv biases INCLUDED to verify they are
# exactly cancelled by training-mode BN).
# ----------------------------------------------------------------------------

def double_conv_ref(x_nchw, params):
    w1, b1, g1, be1, w2, b2, g2, be2 = params

    def block(x, w, b, g, be):
        y = lax.conv_general_dilated(
            x, w, (1, 1), "SAME",
            dimension_numbers=("NHWC", "HWIO", "NHWC"))
        y = y + b.reshape(1, 1, 1, -1)
        m = jnp.mean(y, axis=(0, 1, 2))
        v = jnp.mean((y - m) ** 2, axis=(0, 1, 2))
        y = (y - m) * lax.rsqrt(v + BN_EPS) * g.reshape(1, 1, 1, -1) \
            + be.reshape(1, 1, 1, -1)
        return jnp.maximum(y, 0.0)

    x = jnp.transpose(x_nchw, (0, 2, 3, 1))
    y = block(x, w1, b1, g1, be1)
    y = block(y, w2, b2, g2, be2)
    return jnp.transpose(y, (0, 3, 1, 2))


if __name__ == "__main__":
    N, Cin, Cout, H, W = 2, 4, 8, 16, 16
    key = jax.random.PRNGKey(0)
    ks = jax.random.split(key, 9)

    x = jax.random.normal(ks[0], (N, Cin, H, W), jnp.float32)
    # Conv weights in HWIO layout (3, 3, Cin, Cout); BN/bias params as (C,).
    w1 = 0.1 * jax.random.normal(ks[1], (3, 3, Cin, Cout), jnp.float32)
    b1 = 0.1 * jax.random.normal(ks[2], (Cout,), jnp.float32)
    g1 = 1.0 + 0.1 * jax.random.normal(ks[3], (Cout,), jnp.float32)
    be1 = 0.1 * jax.random.normal(ks[4], (Cout,), jnp.float32)
    w2 = 0.1 * jax.random.normal(ks[5], (3, 3, Cout, Cout), jnp.float32)
    b2 = 0.1 * jax.random.normal(ks[6], (Cout,), jnp.float32)
    g2 = 1.0 + 0.1 * jax.random.normal(ks[7], (Cout,), jnp.float32)
    be2 = 0.1 * jax.random.normal(ks[8], (Cout,), jnp.float32)
    params = (w1, b1, g1, be1, w2, b2, g2, be2)

    run = jax.jit(double_conv, static_argnames=("compute_dtype",))
    ref = jax.block_until_ready(double_conv_ref(x, params))

    # f32 MXU operands: tight check against the f32 reference.
    out_f32 = jax.block_until_ready(run(x, params, compute_dtype=jnp.float32))
    assert out_f32.shape == (N, Cout, H, W), out_f32.shape
    err_f32 = float(jnp.max(jnp.abs(out_f32 - ref)))
    assert err_f32 < 1e-3, f"f32 mismatch vs reference: {err_f32}"

    # bf16 MXU operands (f32 accumulation, f32 BN/ReLU): loose check —
    # error is dominated by bf16 rounding of conv inputs (~1e-2 level).
    out_bf16 = jax.block_until_ready(run(x, params, compute_dtype=jnp.bfloat16))
    err_bf16 = float(jnp.max(jnp.abs(out_bf16 - ref)))
    assert err_bf16 < 1e-1, f"bf16 mismatch vs reference: {err_bf16}"

    print("KERNEL_OK")
</pallas_src>

<mosaic_0001>
module attributes {stable_mosaic.version = 11 : i64} {
  func.func @_conv1_kernel(%arg0: i32, %arg1: memref<1x16x64xf32, #tpu.memory_space<vmem>>, %arg2: memref<3x64x128xf32, #tpu.memory_space<vmem>>, %arg3: memref<128x8xf32, #tpu.memory_space<vmem>>, %arg4: memref<8x128xf32, #tpu.memory_space<vmem>>, %arg5: memref<1x16x128xf32, #tpu.memory_space<vmem>>, %arg6: memref<1x1x8xf32, #tpu.memory_space<vmem>>, %arg7: memref<1x1x8xf32, #tpu.memory_space<vmem>>) attributes {dimension_semantics = [#tpu.dimension_semantics<parallel>], iteration_bounds = array<i64: 2>, scalar_prefetch = 0 : i64, scratch_operands = 0 : i64, tpu.core_type = #tpu.core_type<tc>, window_params = [{transform_indices = @transform_0, window_bounds = array<i64: 1, 16, 64>}, {pipeline_mode = #tpu.pipeline_mode<synchronous>, transform_indices = @transform_1, window_bounds = array<i64: 3, 64, 128>}, {pipeline_mode = #tpu.pipeline_mode<synchronous>, transform_indices = @transform_2, window_bounds = array<i64: 128, 8>}, {pipeline_mode = #tpu.pipeline_mode<synchronous>, transform_indices = @transform_3, window_bounds = array<i64: 8, 128>}, {transform_indices = @transform_4, window_bounds = array<i64: 1, 16, 128>}, {transform_indices = @transform_5, window_bounds = array<i64: 1, 1, 8>}, {transform_indices = @transform_6, window_bounds = array<i64: 1, 1, 8>}]} {
    %c0 = arith.constant 0 : index
    %c0_0 = arith.constant 0 : index
    %c0_1 = arith.constant 0 : index
    %0 = vector.load %arg1[%c0, %c0_0, %c0_1] : memref<1x16x64xf32, #tpu.memory_space<vmem>>, vector<1x16x64xf32>
    %1 = vector.shape_cast %0 : vector<1x16x64xf32> to vector<16x64xf32>
    %cst = arith.constant 0.000000e+00 : f32
    %2 = vector.broadcast %cst : f32 to vector<1x64xf32>
    %3 = tpu.concatenate %2, %1, %2 in 0 : vector<1x64xf32>, vector<16x64xf32>, vector<1x64xf32> -> vector<18x64xf32>
    %cst_2 = arith.constant 0.000000e+00 : f32
    %4 = vector.broadcast %cst_2 : f32 to vector<16x128xf32>
    %5 = vector.extract_strided_slice %3 {offsets = [0, 0], sizes = [16, 64], strides = [1, 1]} : vector<18x64xf32> to vector<16x64xf32>
    %c0_3 = arith.constant 0 : index
    %c0_4 = arith.constant 0 : index
    %c0_5 = arith.constant 0 : index
    %6 = vector.load %arg2[%c0_3, %c0_4, %c0_5] : memref<3x64x128xf32, #tpu.memory_space<vmem>>, vector<1x64x128xf32>
    %7 = vector.shape_cast %6 : vector<1x64x128xf32> to vector<64x128xf32>
    %cst_6 = arith.constant dense<0.000000e+00> : vector<16x128xf32>
    %8 = tpu.matmul %5, %7, %cst_6 {dimension_numbers = #tpu.dot_dimension_numbers<[1], [0], [0], [1], [0, 0, 1, 1], [], []>} : vector<16x64xf32>, vector<64x128xf32>, vector<16x128xf32> -> vector<16x128xf32>
    %9 = arith.addf %4, %8 : vector<16x128xf32>
    %10 = vector.extract_strided_slice %3 {offsets = [1, 0], sizes = [16, 64], strides = [1, 1]} : vector<18x64xf32> to vector<16x64xf32>
    %c1 = arith.constant 1 : index
    %c0_7 = arith.constant 0 : index
    %c0_8 = arith.constant 0 : index
    %11 = vector.load %arg2[%c1, %c0_7, %c0_8] : memref<3x64x128xf32, #tpu.memory_space<vmem>>, vector<1x64x128xf32>
    %12 = vector.shape_cast %11 : vector<1x64x128xf32> to vector<64x128xf32>
    %cst_9 = arith.constant dense<0.000000e+00> : vector<16x128xf32>
    %13 = tpu.matmul %10, %12, %cst_9 {dimension_numbers = #tpu.dot_dimension_numbers<[1], [0], [0], [1], [0, 0, 1, 1], [], []>} : vector<16x64xf32>, vector<64x128xf32>, vector<16x128xf32> -> vector<16x128xf32>
    %14 = arith.addf %9, %13 : vector<16x128xf32>
    %15 = vector.extract_strided_slice %3 {offsets = [2, 0], sizes = [16, 64], strides = [1, 1]} : vector<18x64xf32> to vector<16x64xf32>
    %c2 = arith.constant 2 : index
    %c0_10 = arith.constant 0 : index
    %c0_11 = arith.constant 0 : index
    %16 = vector.load %arg2[%c2, %c0_10, %c0_11] : memref<3x64x128xf32, #tpu.memory_space<vmem>>, vector<1x64x128xf32>
    %17 = vector.shape_cast %16 : vector<1x64x128xf32> to vector<64x128xf32>
    %cst_12 = arith.constant dense<0.000000e+00> : vector<16x128xf32>
    %18 = tpu.matmul %15, %17, %cst_12 {dimension_numbers = #tpu.dot_dimension_numbers<[1], [0], [0], [1], [0, 0, 1, 1], [], []>} : vector<16x64xf32>, vector<64x128xf32>, vector<16x128xf32> -> vector<16x128xf32>
    %19 = arith.addf %14, %18 : vector<16x128xf32>
    %c0_13 = arith.constant 0 : index
    %c0_14 = arith.constant 0 : index
    %c0_15 = arith.constant 0 : index
    %20 = vector.load %arg5[%c0_13, %c0_14, %c0_15] : memref<1x16x128xf32, #tpu.memory_space<vmem>>, vector<1x16x128xf32>
    %21 = vector.shape_cast %20 : vector<1x16x128xf32> to vector<16x128xf32>
    %22 = vector.shape_cast %19 : vector<16x128xf32> to vector<1x16x128xf32>
    tpu.vector_store %arg5[%c0_13, %c0_14, %c0_15], %22 {strides = array<i32>} : memref<1x16x128xf32, #tpu.memory_space<vmem>>, vector<1x16x128xf32>,
    %c0_16 = arith.constant 0 : index
    %c0_17 = arith.constant 0 : index
    %23 = vector.load %arg3[%c0_16, %c0_17] : memref<128x8xf32, #tpu.memory_space<vmem>>, vector<128x8xf32>
    %c0_18 = arith.constant 0 : index
    %c0_19 = arith.constant 0 : index
    %24 = vector.load %arg4[%c0_18, %c0_19] : memref<8x128xf32, #tpu.memory_space<vmem>>, vector<8x128xf32>
    %cst_20 = arith.constant dense<0.000000e+00> : vector<128xf32>
    %25 = vector.multi_reduction <add>, %19, %cst_20 [0] : vector<16x128xf32> to vector<128xf32>
    %26 = vector.shape_cast %25 : vector<128xf32> to vector<1x128xf32>
    %cst_21 = arith.constant dense<0.000000e+00> : vector<1x8xf32>
    %27 = tpu.matmul %26, %23, %cst_21 {dimension_numbers = #tpu.dot_dimension_numbers<[1], [0], [0], [1], [0, 0, 1, 1], [], []>} : vector<1x128xf32>, vector<128x8xf32>, vector<1x8xf32> -> vector<1x8xf32>
    %cst_22 = arith.constant 3.906250e-03 : f32
    %28 = vector.broadcast %cst_22 : f32 to vector<1x8xf32>
    %29 = arith.mulf %27, %28 : vector<1x8xf32>
    %cst_23 = arith.constant dense<0.000000e+00> : vector<1x128xf32>
    %30 = tpu.matmul %29, %24, %cst_23 {dimension_numbers = #tpu.dot_dimension_numbers<[1], [0], [0], [1], [0, 0, 1, 1], [], []>} : vector<1x8xf32>, vector<8x128xf32>, vector<1x128xf32> -> vector<1x128xf32>
    %31 = vector.broadcast %30 : vector<1x128xf32> to vector<16x128xf32>
    %32 = arith.subf %19, %31 : vector<16x128xf32>
    %33 = arith.mulf %32, %32 : vector<16x128xf32>
    %cst_24 = arith.constant dense<0.000000e+00> : vector<128xf32>
    %34 = vector.multi_reduction <add>, %33, %cst_24 [0] : vector<16x128xf32> to vector<128xf32>
    %35 = vector.shape_cast %34 : vector<128xf32> to vector<1x128xf32>
    %cst_25 = arith.constant dense<0.000000e+00> : vector<1x8xf32>
    %36 = tpu.matmul %35, %23, %cst_25 {dimension_numbers = #tpu.dot_dimension_numbers<[1], [0], [0], [1], [0, 0, 1, 1], [], []>} : vector<1x128xf32>, vector<128x8xf32>, vector<1x8xf32> -> vector<1x8xf32>
    %c0_26 = arith.constant 0 : index
    %c0_27 = arith.constant 0 : index
    %c0_28 = arith.constant 0 : index
    %37 = vector.load %arg6[%c0_26, %c0_27, %c0_28] : memref<1x1x8xf32, #tpu.memory_space<vmem>>, vector<1x1x8xf32>
    %38 = vector.shape_cast %37 : vector<1x1x8xf32> to vector<1x8xf32>
    %39 = vector.shape_cast %27 : vector<1x8xf32> to vector<1x1x8xf32>
    tpu.vector_store %arg6[%c0_26, %c0_27, %c0_28], %39 {strides = array<i32>} : memref<1x1x8xf32, #tpu.memory_space<vmem>>, vector<1x1x8xf32>,
    %c0_29 = arith.constant 0 : index
    %c0_30 = arith.constant 0 : index
    %c0_31 = arith.constant 0 : index
    %40 = vector.load %arg7[%c0_29, %c0_30, %c0_31] : memref<1x1x8xf32, #tpu.memory_space<vmem>>, vector<1x1x8xf32>
    %41 = vector.shape_cast %40 : vector<1x1x8xf32> to vector<1x8xf32>
    %42 = vector.shape_cast %36 : vector<1x8xf32> to vector<1x1x8xf32>
    tpu.vector_store %arg7[%c0_29, %c0_30, %c0_31], %42 {strides = array<i32>} : memref<1x1x8xf32, #tpu.memory_space<vmem>>, vector<1x1x8xf32>,
    return
  }
  func.func @transform_0(%arg0: i32) -> (i32, i32, i32) {
    %c0_i32 = arith.constant 0 : i32
    %c0_i32_0 = arith.constant 0 : i32
    %c0_i32_1 = arith.constant 0 : i32
    return %arg0, %c0_i32, %c0_i32_0 : i32, i32, i32
  }
  func.func @transform_1(%arg0: i32) -> (i32, i32, i32) {
    %c0_i32 = arith.constant 0 : i32
    %c0_i32_0 = arith.constant 0 : i32
    %c0_i32_1 = arith.constant 0 : i32
    %c0_i32_2 = arith.constant 0 : i32
    return %c0_i32, %c0_i32_0, %c0_i32_1 : i32, i32, i32
  }
  func.func @transform_2(%arg0: i32) -> (i32, i32) {
    %c0_i32 = arith.constant 0 : i32
    %c0_i32_0 = arith.constant 0 : i32
    %c0_i32_1 = arith.constant 0 : i32
    return %c0_i32, %c0_i32_0 : i32, i32
  }
  func.func @transform_3(%arg0: i32) -> (i32, i32) {
    %c0_i32 = arith.constant 0 : i32
    %c0_i32_0 = arith.constant 0 : i32
    %c0_i32_1 = arith.constant 0 : i32
    return %c0_i32, %c0_i32_0 : i32, i32
  }
  func.func @transform_4(%arg0: i32) -> (i32, i32, i32) {
    %c0_i32 = arith.constant 0 : i32
    %c0_i32_0 = arith.constant 0 : i32
    %c0_i32_1 = arith.constant 0 : i32
    return %arg0, %c0_i32, %c0_i32_0 : i32, i32, i32
  }
  func.func @transform_5(%arg0: i32) -> (i32, i32, i32) {
    %c0_i32 = arith.constant 0 : i32
    %c0_i32_0 = arith.constant 0 : i32
    %c0_i32_1 = arith.constant 0 : i32
    return %arg0, %c0_i32, %c0_i32_0 : i32, i32, i32
  }
  func.func @transform_6(%arg0: i32) -> (i32, i32, i32) {
    %c0_i32 = arith.constant 0 : i32
    %c0_i32_0 = arith.constant 0 : i32
    %c0_i32_1 = arith.constant 0 : i32
    return %arg0, %c0_i32, %c0_i32_0 : i32, i32, i32
  }
}

module attributes {stable_mosaic.version = 11 : i64} {
  func.func @_bn_relu_conv2_kernel(%arg0: i32, %arg1: memref<1x16x128xf32, #tpu.memory_space<vmem>>, %arg2: memref<1x128xf32, #tpu.memory_space<vmem>>, %arg3: memref<1x128xf32, #tpu.memory_space<vmem>>, %arg4: memref<3x128x128xf32, #tpu.memory_space<vmem>>, %arg5: memref<128x8xf32, #tpu.memory_space<vmem>>, %arg6: memref<8x128xf32, #tpu.memory_space<vmem>>, %arg7: memref<1x16x128xf32, #tpu.memory_space<vmem>>, %arg8: memref<1x1x8xf32, #tpu.memory_space<vmem>>, %arg9: memref<1x1x8xf32, #tpu.memory_space<vmem>>) attributes {dimension_semantics = [#tpu.dimension_semantics<parallel>], iteration_bounds = array<i64: 2>, scalar_prefetch = 0 : i64, scratch_operands = 0 : i64, tpu.core_type = #tpu.core_type<tc>, window_params = [{transform_indices = @transform_0, window_bounds = array<i64: 1, 16, 128>}, {pipeline_mode = #tpu.pipeline_mode<synchronous>, transform_indices = @transform_1, window_bounds = array<i64: 1, 128>}, {pipeline_mode = #tpu.pipeline_mode<synchronous>, transform_indices = @transform_2, window_bounds = array<i64: 1, 128>}, {pipeline_mode = #tpu.pipeline_mode<synchronous>, transform_indices = @transform_3, window_bounds = array<i64: 3, 128, 128>}, {pipeline_mode = #tpu.pipeline_mode<synchronous>, transform_indices = @transform_4, window_bounds = array<i64: 128, 8>}, {pipeline_mode = #tpu.pipeline_mode<synchronous>, transform_indices = @transform_5, window_bounds = array<i64: 8, 128>}, {transform_indices = @transform_6, window_bounds = array<i64: 1, 16, 128>}, {transform_indices = @transform_7, window_bounds = array<i64: 1, 1, 8>}, {transform_indices = @transform_8, window_bounds = array<i64: 1, 1, 8>}]} {
    %c0 = arith.constant 0 : index
    %c0_0 = arith.constant 0 : index
    %c0_1 = arith.constant 0 : index
    %0 = vector.load %arg1[%c0, %c0_0, %c0_1] : memref<1x16x128xf32, #tpu.memory_space<vmem>>, vector<1x16x128xf32>
    %1 = vector.shape_cast %0 : vector<1x16x128xf32> to vector<16x128xf32>
    %c0_2 = arith.constant 0 : index
    %c0_3 = arith.constant 0 : index
    %2 = vector.load %arg2[%c0_2, %c0_3] : memref<1x128xf32, #tpu.memory_space<vmem>>, vector<1x128xf32>
    %3 = vector.broadcast %2 : vector<1x128xf32> to vector<16x128xf32>
    %4 = arith.mulf %1, %3 : vector<16x128xf32>
    %c0_4 = arith.constant 0 : index
    %c0_5 = arith.constant 0 : index
    %5 = vector.load %arg3[%c0_4, %c0_5] : memref<1x128xf32, #tpu.memory_space<vmem>>, vector<1x128xf32>
    %6 = vector.broadcast %5 : vector<1x128xf32> to vector<16x128xf32>
    %7 = arith.addf %4, %6 : vector<16x128xf32>
    %cst = arith.constant 0.000000e+00 : f32
    %8 = vector.broadcast %cst : f32 to vector<16x128xf32>
    %9 = arith.maximumf %7, %8 : vector<16x128xf32>
    %cst_6 = arith.constant 0.000000e+00 : f32
    %10 = vector.broadcast %cst_6 : f32 to vector<1x128xf32>
    %11 = tpu.concatenate %10, %9, %10 in 0 : vector<1x128xf32>, vector<16x128xf32>, vector<1x128xf32> -> vector<18x128xf32>
    %cst_7 = arith.constant 0.000000e+00 : f32
    %12 = vector.broadcast %cst_7 : f32 to vector<16x128xf32>
    %13 = vector.extract_strided_slice %11 {offsets = [0, 0], sizes = [16, 128], strides = [1, 1]} : vector<18x128xf32> to vector<16x128xf32>
    %c0_8 = arith.constant 0 : index
    %c0_9 = arith.constant 0 : index
    %c0_10 = arith.constant 0 : index
    %14 = vector.load %arg4[%c0_8, %c0_9, %c0_10] : memref<3x128x128xf32, #tpu.memory_space<vmem>>, vector<1x128x128xf32>
    %15 = vector.shape_cast %14 : vector<1x128x128xf32> to vector<128x128xf32>
    %cst_11 = arith.constant dense<0.000000e+00> : vector<16x128xf32>
    %16 = tpu.matmul %13, %15, %cst_11 {dimension_numbers = #tpu.dot_dimension_numbers<[1], [0], [0], [1], [0, 0, 1, 1], [], []>} : vector<16x128xf32>, vector<128x128xf32>, vector<16x128xf32> -> vector<16x128xf32>
    %17 = arith.addf %12, %16 : vector<16x128xf32>
    %18 = vector.extract_strided_slice %11 {offsets = [1, 0], sizes = [16, 128], strides = [1, 1]} : vector<18x128xf32> to vector<16x128xf32>
    %c1 = arith.constant 1 : index
    %c0_12 = arith.constant 0 : index
    %c0_13 = arith.constant 0 : index
    %19 = vector.load %arg4[%c1, %c0_12, %c0_13] : memref<3x128x128xf32, #tpu.memory_space<vmem>>, vector<1x128x128xf32>
    %20 = vector.shape_cast %19 : vector<1x128x128xf32> to vector<128x128xf32>
    %cst_14 = arith.constant dense<0.000000e+00> : vector<16x128xf32>
    %21 = tpu.matmul %18, %20, %cst_14 {dimension_numbers = #tpu.dot_dimension_numbers<[1], [0], [0], [1], [0, 0, 1, 1], [], []>} : vector<16x128xf32>, vector<128x128xf32>, vector<16x128xf32> -> vector<16x128xf32>
    %22 = arith.addf %17, %21 : vector<16x128xf32>
    %23 = vector.extract_strided_slice %11 {offsets = [2, 0], sizes = [16, 128], strides = [1, 1]} : vector<18x128xf32> to vector<16x128xf32>
    %c2 = arith.constant 2 : index
    %c0_15 = arith.constant 0 : index
    %c0_16 = arith.constant 0 : index
    %24 = vector.load %arg4[%c2, %c0_15, %c0_16] : memref<3x128x128xf32, #tpu.memory_space<vmem>>, vector<1x128x128xf32>
    %25 = vector.shape_cast %24 : vector<1x128x128xf32> to vector<128x128xf32>
    %cst_17 = arith.constant dense<0.000000e+00> : vector<16x128xf32>
    %26 = tpu.matmul %23, %25, %cst_17 {dimension_numbers = #tpu.dot_dimension_numbers<[1], [0], [0], [1], [0, 0, 1, 1], [], []>} : vector<16x128xf32>, vector<128x128xf32>, vector<16x128xf32> -> vector<16x128xf32>
    %27 = arith.addf %22, %26 : vector<16x128xf32>
    %c0_18 = arith.constant 0 : index
    %c0_19 = arith.constant 0 : index
    %c0_20 = arith.constant 0 : index
    %28 = vector.load %arg7[%c0_18, %c0_19, %c0_20] : memref<1x16x128xf32, #tpu.memory_space<vmem>>, vector<1x16x128xf32>
    %29 = vector.shape_cast %28 : vector<1x16x128xf32> to vector<16x128xf32>
    %30 = vector.shape_cast %27 : vector<16x128xf32> to vector<1x16x128xf32>
    tpu.vector_store %arg7[%c0_18, %c0_19, %c0_20], %30 {strides = array<i32>} : memref<1x16x128xf32, #tpu.memory_space<vmem>>, vector<1x16x128xf32>,
    %c0_21 = arith.constant 0 : index
    %c0_22 = arith.constant 0 : index
    %31 = vector.load %arg5[%c0_21, %c0_22] : memref<128x8xf32, #tpu.memory_space<vmem>>, vector<128x8xf32>
    %c0_23 = arith.constant 0 : index
    %c0_24 = arith.constant 0 : index
    %32 = vector.load %arg6[%c0_23, %c0_24] : memref<8x128xf32, #tpu.memory_space<vmem>>, vector<8x128xf32>
    %cst_25 = arith.constant dense<0.000000e+00> : vector<128xf32>
    %33 = vector.multi_reduction <add>, %27, %cst_25 [0] : vector<16x128xf32> to vector<128xf32>
    %34 = vector.shape_cast %33 : vector<128xf32> to vector<1x128xf32>
    %cst_26 = arith.constant dense<0.000000e+00> : vector<1x8xf32>
    %35 = tpu.matmul %34, %31, %cst_26 {dimension_numbers = #tpu.dot_dimension_numbers<[1], [0], [0], [1], [0, 0, 1, 1], [], []>} : vector<1x128xf32>, vector<128x8xf32>, vector<1x8xf32> -> vector<1x8xf32>
    %cst_27 = arith.constant 3.906250e-03 : f32
    %36 = vector.broadcast %cst_27 : f32 to vector<1x8xf32>
    %37 = arith.mulf %35, %36 : vector<1x8xf32>
    %cst_28 = arith.constant dense<0.000000e+00> : vector<1x128xf32>
    %38 = tpu.matmul %37, %32, %cst_28 {dimension_numbers = #tpu.dot_dimension_numbers<[1], [0], [0], [1], [0, 0, 1, 1], [], []>} : vector<1x8xf32>, vector<8x128xf32>, vector<1x128xf32> -> vector<1x128xf32>
    %39 = vector.broadcast %38 : vector<1x128xf32> to vector<16x128xf32>
    %40 = arith.subf %27, %39 : vector<16x128xf32>
    %41 = arith.mulf %40, %40 : vector<16x128xf32>
    %cst_29 = arith.constant dense<0.000000e+00> : vector<128xf32>
    %42 = vector.multi_reduction <add>, %41, %cst_29 [0] : vector<16x128xf32> to vector<128xf32>
    %43 = vector.shape_cast %42 : vector<128xf32> to vector<1x128xf32>
    %cst_30 = arith.constant dense<0.000000e+00> : vector<1x8xf32>
    %44 = tpu.matmul %43, %31, %cst_30 {dimension_numbers = #tpu.dot_dimension_numbers<[1], [0], [0], [1], [0, 0, 1, 1], [], []>} : vector<1x128xf32>, vector<128x8xf32>, vector<1x8xf32> -> vector<1x8xf32>
    %c0_31 = arith.constant 0 : index
    %c0_32 = arith.constant 0 : index
    %c0_33 = arith.constant 0 : index
    %45 = vector.load %arg8[%c0_31, %c0_32, %c0_33] : memref<1x1x8xf32, #tpu.memory_space<vmem>>, vector<1x1x8xf32>
    %46 = vector.shape_cast %45 : vector<1x1x8xf32> to vector<1x8xf32>
    %47 = vector.shape_cast %35 : vector<1x8xf32> to vector<1x1x8xf32>
    tpu.vector_store %arg8[%c0_31, %c0_32, %c0_33], %47 {strides = array<i32>} : memref<1x1x8xf32, #tpu.memory_space<vmem>>, vector<1x1x8xf32>,
    %c0_34 = arith.constant 0 : index
    %c0_35 = arith.constant 0 : index
    %c0_36 = arith.constant 0 : index
    %48 = vector.load %arg9[%c0_34, %c0_35, %c0_36] : memref<1x1x8xf32, #tpu.memory_space<vmem>>, vector<1x1x8xf32>
    %49 = vector.shape_cast %48 : vector<1x1x8xf32> to vector<1x8xf32>
    %50 = vector.shape_cast %44 : vector<1x8xf32> to vector<1x1x8xf32>
    tpu.vector_store %arg9[%c0_34, %c0_35, %c0_36], %50 {strides = array<i32>} : memref<1x1x8xf32, #tpu.memory_space<vmem>>, vector<1x1x8xf32>,
    return
  }
  func.func @transform_0(%arg0: i32) -> (i32, i32, i32) {
    %c0_i32 = arith.constant 0 : i32
    %c0_i32_0 = arith.constant 0 : i32
    %c0_i32_1 = arith.constant 0 : i32
    return %arg0, %c0_i32, %c0_i32_0 : i32, i32, i32
  }
  func.func @transform_1(%arg0: i32) -> (i32, i32) {
    %c0_i32 = arith.constant 0 : i32
    %c0_i32_0 = arith.constant 0 : i32
    %c0_i32_1 = arith.constant 0 : i32
    return %c0_i32, %c0_i32_0 : i32, i32
  }
  func.func @transform_2(%arg0: i32) -> (i32, i32) {
    %c0_i32 = arith.constant 0 : i32
    %c0_i32_0 = arith.constant 0 : i32
    %c0_i32_1 = arith.constant 0 : i32
    return %c0_i32, %c0_i32_0 : i32, i32
  }
  func.func @transform_3(%arg0: i32) -> (i32, i32, i32) {
    %c0_i32 = arith.constant 0 : i32
    %c0_i32_0 = arith.constant 0 : i32
    %c0_i32_1 = arith.constant 0 : i32
    %c0_i32_2 = arith.constant 0 : i32
    return %c0_i32, %c0_i32_0, %c0_i32_1 : i32, i32, i32
  }
  func.func @transform_4(%arg0: i32) -> (i32, i32) {
    %c0_i32 = arith.constant 0 : i32
    %c0_i32_0 = arith.constant 0 : i32
    %c0_i32_1 = arith.constant 0 : i32
    return %c0_i32, %c0_i32_0 : i32, i32
  }
  func.func @transform_5(%arg0: i32) -> (i32, i32) {
    %c0_i32 = arith.constant 0 : i32
    %c0_i32_0 = arith.constant 0 : i32
    %c0_i32_1 = arith.constant 0 : i32
    return %c0_i32, %c0_i32_0 : i32, i32
  }
  func.func @transform_6(%arg0: i32) -> (i32, i32, i32) {
    %c0_i32 = arith.constant 0 : i32
    %c0_i32_0 = arith.constant 0 : i32
    %c0_i32_1 = arith.constant 0 : i32
    return %arg0, %c0_i32, %c0_i32_0 : i32, i32, i32
  }
  func.func @transform_7(%arg0: i32) -> (i32, i32, i32) {
    %c0_i32 = arith.constant 0 : i32
    %c0_i32_0 = arith.constant 0 : i32
    %c0_i32_1 = arith.constant 0 : i32
    return %arg0, %c0_i32, %c0_i32_0 : i32, i32, i32
  }
  func.func @transform_8(%arg0: i32) -> (i32, i32, i32) {
    %c0_i32 = arith.constant 0 : i32
    %c0_i32_0 = arith.constant 0 : i32
    %c0_i32_1 = arith.constant 0 : i32
    return %arg0, %c0_i32, %c0_i32_0 : i32, i32, i32
  }
}

module attributes {stable_mosaic.version = 11 : i64} {
  func.func @_bn_relu_kernel(%arg0: i32, %arg1: memref<1x16x128xf32, #tpu.memory_space<vmem>>, %arg2: memref<1x128xf32, #tpu.memory_space<vmem>>, %arg3: memref<1x128xf32, #tpu.memory_space<vmem>>, %arg4: memref<1x16x128xf32, #tpu.memory_space<vmem>>) attributes {dimension_semantics = [#tpu.dimension_semantics<parallel>], iteration_bounds = array<i64: 2>, scalar_prefetch = 0 : i64, scratch_operands = 0 : i64, tpu.core_type = #tpu.core_type<tc>, window_params = [{transform_indices = @transform_0, window_bounds = array<i64: 1, 16, 128>}, {pipeline_mode = #tpu.pipeline_mode<synchronous>, transform_indices = @transform_1, window_bounds = array<i64: 1, 128>}, {pipeline_mode = #tpu.pipeline_mode<synchronous>, transform_indices = @transform_2, window_bounds = array<i64: 1, 128>}, {transform_indices = @transform_3, window_bounds = array<i64: 1, 16, 128>}]} {
    %c0 = arith.constant 0 : index
    %c0_0 = arith.constant 0 : index
    %c0_1 = arith.constant 0 : index
    %0 = vector.load %arg1[%c0, %c0_0, %c0_1] : memref<1x16x128xf32, #tpu.memory_space<vmem>>, vector<1x16x128xf32>
    %1 = vector.shape_cast %0 : vector<1x16x128xf32> to vector<16x128xf32>
    %c0_2 = arith.constant 0 : index
    %c0_3 = arith.constant 0 : index
    %2 = vector.load %arg2[%c0_2, %c0_3] : memref<1x128xf32, #tpu.memory_space<vmem>>, vector<1x128xf32>
    %3 = vector.broadcast %2 : vector<1x128xf32> to vector<16x128xf32>
    %4 = arith.mulf %1, %3 : vector<16x128xf32>
    %c0_4 = arith.constant 0 : index
    %c0_5 = arith.constant 0 : index
    %5 = vector.load %arg3[%c0_4, %c0_5] : memref<1x128xf32, #tpu.memory_space<vmem>>, vector<1x128xf32>
    %6 = vector.broadcast %5 : vector<1x128xf32> to vector<16x128xf32>
    %7 = arith.addf %4, %6 : vector<16x128xf32>
    %cst = arith.constant 0.000000e+00 : f32
    %8 = vector.broadcast %cst : f32 to vector<16x128xf32>
    %9 = arith.maximumf %7, %8 : vector<16x128xf32>
    %c0_6 = arith.constant 0 : index
    %c0_7 = arith.constant 0 : index
    %c0_8 = arith.constant 0 : index
    %10 = vector.load %arg4[%c0_6, %c0_7, %c0_8] : memref<1x16x128xf32, #tpu.memory_space<vmem>>, vector<1x16x128xf32>
    %11 = vector.shape_cast %10 : vector<1x16x128xf32> to vector<16x128xf32>
    %12 = vector.shape_cast %9 : vector<16x128xf32> to vector<1x16x128xf32>
    tpu.vector_store %arg4[%c0_6, %c0_7, %c0_8], %12 {strides = array<i32>} : memref<1x16x128xf32, #tpu.memory_space<vmem>>, vector<1x16x128xf32>,
    return
  }
  func.func @transform_0(%arg0: i32) -> (i32, i32, i32) {
    %c0_i32 = arith.constant 0 : i32
    %c0_i32_0 = arith.constant 0 : i32
    %c0_i32_1 = arith.constant 0 : i32
    return %arg0, %c0_i32, %c0_i32_0 : i32, i32, i32
  }
  func.func @transform_1(%arg0: i32) -> (i32, i32) {
    %c0_i32 = arith.constant 0 : i32
    %c0_i32_0 = arith.constant 0 : i32
    %c0_i32_1 = arith.constant 0 : i32
    return %c0_i32, %c0_i32_0 : i32, i32
  }
  func.func @transform_2(%arg0: i32) -> (i32, i32) {
    %c0_i32 = arith.constant 0 : i32
    %c0_i32_0 = arith.constant 0 : i32
    %c0_i32_1 = arith.constant 0 : i32
    return %c0_i32, %c0_i32_0 : i32, i32
  }
  func.func @transform_3(%arg0: i32) -> (i32, i32, i32) {
    %c0_i32 = arith.constant 0 : i32
    %c0_i32_0 = arith.constant 0 : i32
    %c0_i32_1 = arith.constant 0 : i32
    return %arg0, %c0_i32, %c0_i32_0 : i32, i32, i32
  }
}

</mosaic_0001>

<bundles_post_ra>
// kernel: tile.34
= control target key start
LH: loop header
LB: loop body
LE: loop exit
PB: predicated region body
PF: predicated region fallthrough
CT: control target
= control target key end

     0   :  { %vm6_vm0 = vcmask 1043458   ;;  %vm10_vm1 = vcmask 1045508   ;;  %vm14_vm2 = vcmask 1047558   ;;  %s19_s6 = smov 3  ;;  %s22_s7 = smov 12  ;;  %vm16_vm3 = vcmask 64512   ;;  %s736_s0 = inlined_call_operand.vmem [shape: f32[16,8,8], index: 0, kind: input, shape index: {}]   ;;  %s737_s1 = inlined_call_operand.vmem [shape: f32[128,8], index: 1, kind: output, shape index: {}]  }
   0x1   :  { %v348_v0 = vld [vmem:[%s736_s0 + $0xf] ss:$16 sm:%s19_s6]   ;;  %s27_s12 = smov 48  ;;  %s32_s13 = smov 192  ;;  %vm38_vm4 = vcmask 1048512   ;;  %vm60_vm5 = vcmask 982912  }
   0x2   :  { %v349_v1 = vld [vmem:[%s736_s0 + $0xf] ss:$16 sm:%s22_s7]   ;;  %s63_s18 = smov 3  ;;  %s66_s21 = smov 12  ;;  %vm82_vm6 = vcmask 917312   ;;  %vm104_vm7 = vcmask 851712  }
   0x3   :  { %v25_v2 = vsel %vm6_vm0, %v349_v1, %v348_v0  ;;  %v350_v3 = vld [vmem:[%s736_s0 + $0xf] ss:$16 sm:%s27_s12]   ;;  %v356_v6 = vld [vmem:[%s736_s0 + $0xd] ss:$16 sm:%s63_s18]   ;;  %s71_s22 = smov 48  ;;  %s76_s27 = smov 192 }
   0x4   :  { %v351_v4 = vld [vmem:[%s736_s0 + $0xf] ss:$16 sm:%s32_s13]   ;;  %v30_v5 = vsel %vm10_vm1, %v350_v3, %v25_v2  ;;  %v357_v8 = vld [vmem:[%s736_s0 + $0xd] ss:$16 sm:%s66_s21]   ;;  %s423_s28 = smov 120   ;;  %s41_s2 = smov 3 }
   0x5   :  { %v35_v7 = vsel %vm14_vm2, %v351_v4, %v30_v5  ;;  %v358_v9 = vld [vmem:[%s736_s0 + $0xd] ss:$16 sm:%s71_s22]   ;;  %v69_v10 = vsel %vm6_vm0, %v357_v8, %v356_v6  ;;  %s44_s3 = smov 12  ;;  %v352_v13 = vld [vmem:[%s736_s0 + $0xe] ss:$16 sm:%s41_s2]   ;;  %s49_s8 = smov 48 }
   0x6   :  { %36 = vrot.lane.b32.xlu0 %v35_v7, %s423_s28  ;;  %v359_v11 = vld [vmem:[%s736_s0 + $0xd] ss:$16 sm:%s76_s27]   ;;  %v74_v12 = vsel %vm10_vm1, %v358_v9, %v69_v10  ;;  %s54_s9 = smov 192  ;;  %s85_s14 = smov 3  ;;  %vm126_vm8 = vcmask 786112   ;;  %vm148_vm9 = vcmask 720512  }
   0x7   :  { %v353_v14 = vld [vmem:[%s736_s0 + $0xe] ss:$16 sm:%s44_s3]   ;;  %v79_v15 = vsel %vm14_vm2, %v359_v11, %v74_v12  ;;  %s424_s15 = smov 104   ;;  %v360_v20 = vld [vmem:[%s736_s0 + $0xc] ss:$16 sm:%s85_s14]   ;;  %s88_s18 = smov 12 }
   0x8   :  { %v47_v16 = vsel %vm6_vm0, %v353_v14, %v352_v13  ;;  %v354_v17 = vld [vmem:[%s736_s0 + $0xe] ss:$16 sm:%s49_s8]   ;;  %80 = vrot.lane.b32.xlu1 %v79_v15, %s424_s15  ;;  %s93_s19 = smov 48  ;;  %s98_s24 = smov 192  ;;  %vm170_vm10 = vcmask 654912   ;;  %vm192_vm11 = vcmask 589312  }
   0x9   :  { %v355_v18 = vld [vmem:[%s736_s0 + $0xe] ss:$16 sm:%s54_s9]   ;;  %v52_v19 = vsel %vm10_vm1, %v354_v17, %v47_v16  ;;  %v361_v22 = vld [vmem:[%s736_s0 + $0xc] ss:$16 sm:%s88_s18]   ;;  %s425_s25 = smov 112   ;;  %s107_s28 = smov 3 }
   0xa   :  { %v57_v21 = vsel %vm14_vm2, %v355_v18, %v52_v19  ;;  %v362_v23 = vld [vmem:[%s736_s0 + $0xc] ss:$16 sm:%s93_s19]   ;;  %v91_v24 = vsel %vm6_vm0, %v361_v22, %v360_v20  ;;  %s110_s29 = smov 12  ;;  %v364_v27 = vld [vmem:[%s736_s0 + $0xb] ss:$16 sm:%s107_s28]   ;;  %s115_s5 = smov 48 }
   0xb   :  { %58 = vrot.lane.b32.xlu0 %v57_v21, %s425_s25  ;;  %v363_v25 = vld [vmem:[%s736_s0 + $0xc] ss:$16 sm:%s98_s24]   ;;  %v96_v26 = vsel %vm10_vm1, %v362_v23, %v91_v24  ;;  %s120_s6 = smov 192  ;;  %s129_s11 = smov 3  ;;  %vm214_vm12 = vcmask 523712   ;;  %vm236_vm13 = vcmask 458112  }
   0xc   :  { %v365_v28 = vld [vmem:[%s736_s0 + $0xb] ss:$16 sm:%s110_s29]   ;;  %v101_v29 = vsel %vm14_vm2, %v363_v25, %v96_v26  ;;  %s426_s12 = smov 96   ;;  %v368_v34 = vld [vmem:[%s736_s0 + $0xa] ss:$16 sm:%s129_s11]   ;;  %s132_s15 = smov 12 }
   0xd   :  { %v113_v30 = vsel %vm6_vm0, %v365_v28, %v364_v27  ;;  %v366_v31 = vld [vmem:[%s736_s0 + $0xb] ss:$16 sm:%s115_s5]   ;;  %102 = vrot.lane.b32.xlu1 %v101_v29, %s426_s12  ;;  %s137_s16 = smov 48  ;;  %s142_s21 = smov 192  ;;  %vm258_vm14 = vcmask 392512   ;;  %vm280_vm15 = vcmask 326912  }
   0xe   :  { %v367_v32 = vld [vmem:[%s736_s0 + $0xb] ss:$16 sm:%s120_s6]   ;;  %v118_v33 = vsel %vm10_vm1, %v366_v31, %v113_v30  ;;  %v369_v36 = vld [vmem:[%s736_s0 + $0xa] ss:$16 sm:%s132_s15]   ;;  %s427_s22 = smov 88   ;;  %s151_s25 = smov 3 }
   0xf   :  { %v123_v35 = vsel %vm14_vm2, %v367_v32, %v118_v33  ;;  %v370_v37 = vld [vmem:[%s736_s0 + $0xa] ss:$16 sm:%s137_s16]   ;;  %v135_v38 = vsel %vm6_vm0, %v369_v36, %v368_v34  ;;  %s154_s26 = smov 12  ;;  %v372_v41 = vld [vmem:[%s736_s0 + $0x9] ss:$16 sm:%s151_s25]   ;;  %s159_s2 = smov 48 }
  0x10   :  { %124 = vrot.lane.b32.xlu0 %v123_v35, %s427_s22  ;;  %v371_v39 = vld [vmem:[%s736_s0 + $0xa] ss:$16 sm:%s142_s21]   ;;  %v140_v40 = vsel %vm10_vm1, %v370_v37, %v135_v38  ;;  %s164_s3 = smov 192  ;;  %s173_s8 = smov 3 }
  0x11   :  { %v373_v42 = vld [vmem:[%s736_s0 + $0x9] ss:$16 sm:%s154_s26]   ;;  %v145_v43 = vsel %vm14_vm2, %v371_v39, %v140_v40  ;;  %s428_s9 = smov 80   ;;  %v376_v48 = vld [vmem:[%s736_s0 + $0x8] ss:$16 sm:%s173_s8]   ;;  %s176_s12 = smov 12 }
  0x12   :  { %v157_v44 = vsel %vm6_vm0, %v373_v42, %v372_v41  ;;  %v374_v45 = vld [vmem:[%s736_s0 + $0x9] ss:$16 sm:%s159_s2]   ;;  %146 = vrot.lane.b32.xlu1 %v145_v43, %s428_s9  ;;  %s181_s13 = smov 48  ;;  %s186_s18 = smov 192 }
  0x13   :  { %v375_v46 = vld [vmem:[%s736_s0 + $0x9] ss:$16 sm:%s164_s3]   ;;  %v162_v47 = vsel %vm10_vm1, %v374_v45, %v157_v44  ;;  %v377_v50 = vld [vmem:[%s736_s0 + $0x8] ss:$16 sm:%s176_s12]   ;;  %s429_s19 = smov 72   ;;  %s195_s22 = smov 3 }
  0x14   :  { %v167_v49 = vsel %vm14_vm2, %v375_v46, %v162_v47  ;;  %v378_v51 = vld [vmem:[%s736_s0 + $0x8] ss:$16 sm:%s181_s13]   ;;  %v179_v52 = vsel %vm6_vm0, %v377_v50, %v376_v48  ;;  %s198_s23 = smov 12  ;;  %v380_v55 = vld [vmem:[%s736_s0 + $0x7] ss:$16 sm:%s195_s22]   ;;  %s203_s28 = smov 48 }
  0x15   :  { %168 = vrot.lane.b32.xlu0 %v167_v49, %s429_s19  ;;  %v379_v53 = vld [vmem:[%s736_s0 + $0x8] ss:$16 sm:%s186_s18]   ;;  %v184_v54 = vsel %vm10_vm1, %v378_v51, %v179_v52  ;;  %s208_s29 = smov 192  ;;  %s217_s5 = smov 3 }
  0x16   :  { %v381_v56 = vld [vmem:[%s736_s0 + $0x7] ss:$16 sm:%s198_s23]   ;;  %v189_v57 = vsel %vm14_vm2, %v379_v53, %v184_v54  ;;  %s430_s6 = smov 64   ;;  %v384_v62 = vld [vmem:[%s736_s0 + $0x6] ss:$16 sm:%s217_s5]   ;;  %s220_s9 = smov 12 }
  0x17   :  { %v201_v58 = vsel %vm6_vm0, %v381_v56, %v380_v55  ;;  %v382_v59 = vld [vmem:[%s736_s0 + $0x7] ss:$16 sm:%s203_s28]   ;;  %190 = vrot.lane.b32.xlu1 %v189_v57, %s430_s6  ;;  %s225_s10 = smov 48  ;;  %s230_s15 = smov 192 }
  0x18   :  { %v383_v60 = vld [vmem:[%s736_s0 + $0x7] ss:$16 sm:%s208_s29]   ;;  %v206_v61 = vsel %vm10_vm1, %v382_v59, %v201_v58  ;;  %v385_v0 = vld [vmem:[%s736_s0 + $0x6] ss:$16 sm:%s220_s9]   ;;  %s431_s16 = smov 56   ;;  %s239_s19 = smov 3 }
  0x19   :  { %v211_v63 = vsel %vm14_vm2, %v383_v60, %v206_v61  ;;  %v386_v1 = vld [vmem:[%s736_s0 + $0x6] ss:$16 sm:%s225_s10]   ;;  %v223_v2 = vsel %vm6_vm0, %v385_v0, %v384_v62  ;;  %s242_s20 = smov 12  ;;  %v388_v5 = vld [vmem:[%s736_s0 + $0x5] ss:$16 sm:%s239_s19]   ;;  %s247_s25 = smov 48 }
  0x1a   :  { %212 = vrot.lane.b32.xlu0 %v211_v63, %s431_s16  ;;  %v387_v3 = vld [vmem:[%s736_s0 + $0x6] ss:$16 sm:%s230_s15]   ;;  %v228_v4 = vsel %vm10_vm1, %v386_v1, %v223_v2  ;;  %s252_s26 = smov 192  ;;  %s261_s2 = smov 3 }
  0x1b   :  { %v389_v6 = vld [vmem:[%s736_s0 + $0x5] ss:$16 sm:%s242_s20]   ;;  %v233_v7 = vsel %vm14_vm2, %v387_v3, %v228_v4  ;;  %s432_s3 = smov 48   ;;  %v392_v12 = vld [vmem:[%s736_s0 + $0x4] ss:$16 sm:%s261_s2]   ;;  %s264_s6 = smov 12 }
  0x1c   :  { %v245_v8 = vsel %vm6_vm0, %v389_v6, %v388_v5  ;;  %v390_v9 = vld [vmem:[%s736_s0 + $0x5] ss:$16 sm:%s247_s25]   ;;  %234 = vrot.lane.b32.xlu1 %v233_v7, %s432_s3  ;;  %s269_s7 = smov 48  ;;  %s274_s12 = smov 192 }
  0x1d   :  { %v391_v10 = vld [vmem:[%s736_s0 + $0x5] ss:$16 sm:%s252_s26]   ;;  %v250_v11 = vsel %vm10_vm1, %v390_v9, %v245_v8  ;;  %v393_v14 = vld [vmem:[%s736_s0 + $0x4] ss:$16 sm:%s264_s6]   ;;  %s433_s13 = smov 40   ;;  %s283_s16 = smov 3 }
  0x1e   :  { %v255_v13 = vsel %vm14_vm2, %v391_v10, %v250_v11  ;;  %v394_v15 = vld [vmem:[%s736_s0 + $0x4] ss:$16 sm:%s269_s7]   ;;  %v267_v16 = vsel %vm6_vm0, %v393_v14, %v392_v12  ;;  %s286_s17 = smov 12  ;;  %v396_v19 = vld [vmem:[%s736_s0 + $0x3] ss:$16 sm:%s283_s16]   ;;  %s291_s22 = smov 48 }
  0x1f   :  { %256 = vrot.lane.b32.xlu0 %v255_v13, %s433_s13  ;;  %v395_v17 = vld [vmem:[%s736_s0 + $0x4] ss:$16 sm:%s274_s12]   ;;  %v272_v18 = vsel %vm10_vm1, %v394_v15, %v267_v16  ;;  %s296_s23 = smov 192  ;;  %s305_s28 = smov 3 }
  0x20   :  { %v397_v20 = vld [vmem:[%s736_s0 + $0x3] ss:$16 sm:%s286_s17]   ;;  %v277_v21 = vsel %vm14_vm2, %v395_v17, %v272_v18  ;;  %s434_s29 = smov 32   ;;  %v400_v26 = vld [vmem:[%s736_s0 + $0x2] ss:$16 sm:%s305_s28]   ;;  %s308_s3 = smov 12 }
  0x21   :  { %v289_v22 = vsel %vm6_vm0, %v397_v20, %v396_v19  ;;  %v398_v23 = vld [vmem:[%s736_s0 + $0x3] ss:$16 sm:%s291_s22]   ;;  %278 = vrot.lane.b32.xlu1 %v277_v21, %s434_s29  ;;  %s313_s4 = smov 48  ;;  %s318_s9 = smov 192 }
  0x22   :  { %v399_v24 = vld [vmem:[%s736_s0 + $0x3] ss:$16 sm:%s296_s23]   ;;  %v294_v25 = vsel %vm10_vm1, %v398_v23, %v289_v22  ;;  %v401_v28 = vld [vmem:[%s736_s0 + $0x2] ss:$16 sm:%s308_s3]   ;;  %s435_s10 = smov 24   ;;  %s327_s13 = smov 3 }
  0x23   :  { %v299_v27 = vsel %vm14_vm2, %v399_v24, %v294_v25  ;;  %v402_v29 = vld [vmem:[%s736_s0 + $0x2] ss:$16 sm:%s313_s4]   ;;  %v311_v30 = vsel %vm6_vm0, %v401_v28, %v400_v26  ;;  %s330_s14 = smov 12  ;;  %v404_v33 = vld [vmem:[%s736_s0 + $0x1] ss:$16 sm:%s327_s13]   ;;  %s335_s19 = smov 48 }
  0x24   :  { %300 = vrot.lane.b32.xlu0 %v299_v27, %s435_s10  ;;  %v403_v31 = vld [vmem:[%s736_s0 + $0x2] ss:$16 sm:%s318_s9]   ;;  %v316_v32 = vsel %vm10_vm1, %v402_v29, %v311_v30  ;;  %s340_s20 = smov 192  ;;  %s2_s25 = smov 3 }
  0x25   :  { %v405_v34 = vld [vmem:[%s736_s0 + $0x1] ss:$16 sm:%s330_s14]   ;;  %v321_v35 = vsel %vm14_vm2, %v403_v31, %v316_v32  ;;  %s436_s26 = smov 16   ;;  %s4_s27 = smov 12  ;;  %v3_v40 = vld [vmem:[%s736_s0] ss:$16 sm:%s2_s25]  }
  0x26   :  { %v333_v36 = vsel %vm6_vm0, %v405_v34, %v404_v33  ;;  %v406_v37 = vld [vmem:[%s736_s0 + $0x1] ss:$16 sm:%s335_s19]   ;;  %322 = vrot.lane.b32.xlu1 %v321_v35, %s436_s26  ;;  %s8_s28 = smov 48  ;;  %s12_s2 = smov 192 }
  0x27   :  { %v407_v38 = vld [vmem:[%s736_s0 + $0x1] ss:$16 sm:%s340_s20]   ;;  %v338_v39 = vsel %vm10_vm1, %v406_v37, %v333_v36  ;;  %v5_v42 = vld [vmem:[%s736_s0] ss:$16 sm:%s4_s27]   ;;  %s437_s7 = smov 8  }
  0x28   :  { %v343_v41 = vsel %vm14_vm2, %v407_v38, %v338_v39  ;;  %v9_v43 = vld [vmem:[%s736_s0] ss:$16 sm:%s8_s28]   ;;  %v7_v44 = vsel %vm6_vm0, %v5_v42, %v3_v40  ;;  %vm302_vm0 = vcmask 261312  }
  0x29   :  { %344 = vrot.lane.b32.xlu0 %v343_v41, %s437_s7  ;;  %v13_v45 = vld [vmem:[%s736_s0] ss:$16 sm:%s12_s2]   ;;  %v11_v46 = vsel %vm10_vm1, %v9_v43, %v7_v44  ;;  %vm324_vm1 = vcmask 195712  }
  0x2a   :  { %v15_v47 = vsel %vm14_vm2, %v13_v45, %v11_v46  ;;  %vm346_vm2 = vcmask 130112  }
  0x2b   :  { %17 = vst.msk [vmem:[%s737_s1] sm:$0xff] %vm16_vm3, %v15_v47  }
  0x78   :  { %v37_v48 = vpop.permute.xlu0 %36  }
  0x79   :  { %39 = vst.msk [vmem:[%s737_s1] sm:$0xff] %vm38_vm4, %v37_v48  }
  0x7a   :  { %v81_v49 = vpop.permute.xlu1 %80  }
  0x7d   :  { %v59_v50 = vpop.permute.xlu0 %58  }
  0x7e   :  { %61 = vst.msk [vmem:[%s737_s1] sm:$0xff] %vm60_vm5, %v59_v50  }
  0x7f   :  { %83 = vst.msk [vmem:[%s737_s1] sm:$0xff] %vm82_vm6, %v81_v49   ;;  %v103_v51 = vpop.permute.xlu1 %102  }
  0x80   :  { %105 = vst.msk [vmem:[%s737_s1] sm:$0xff] %vm104_vm7, %v103_v51  }
  0x82   :  { %v125_v52 = vpop.permute.xlu0 %124  }
  0x83   :  { %127 = vst.msk [vmem:[%s737_s1] sm:$0xff] %vm126_vm8, %v125_v52  }
  0x84   :  { %v147_v53 = vpop.permute.xlu1 %146  }
  0x85   :  { %149 = vst.msk [vmem:[%s737_s1] sm:$0xff] %vm148_vm9, %v147_v53  }
  0x87   :  { %v169_v54 = vpop.permute.xlu0 %168  }
  0x88   :  { %171 = vst.msk [vmem:[%s737_s1] sm:$0xff] %vm170_vm10, %v169_v54  }
  0x89   :  { %v191_v55 = vpop.permute.xlu1 %190  }
  0x8a   :  { %193 = vst.msk [vmem:[%s737_s1] sm:$0xff] %vm192_vm11, %v191_v55  }
  0x8c   :  { %v213_v56 = vpop.permute.xlu0 %212  }
  0x8d   :  { %215 = vst.msk [vmem:[%s737_s1] sm:$0xff] %vm214_vm12, %v213_v56  }
  0x8e   :  { %v235_v57 = vpop.permute.xlu1 %234  }
  0x8f   :  { %237 = vst.msk [vmem:[%s737_s1] sm:$0xff] %vm236_vm13, %v235_v57  }
  0x91   :  { %v257_v58 = vpop.permute.xlu0 %256  }
  0x92   :  { %259 = vst.msk [vmem:[%s737_s1] sm:$0xff] %vm258_vm14, %v257_v58  }
  0x93   :  { %v279_v59 = vpop.permute.xlu1 %278  }
  0x94   :  { %281 = vst.msk [vmem:[%s737_s1] sm:$0xff] %vm280_vm15, %v279_v59  }
  0x96   :  { %v301_v60 = vpop.permute.xlu0 %300  }
  0x97   :  { %303 = vst.msk [vmem:[%s737_s1] sm:$0xff] %vm302_vm0, %v301_v60  }
  0x98   :  { %v323_v61 = vpop.permute.xlu1 %322  }
  0x99   :  { %325 = vst.msk [vmem:[%s737_s1] sm:$0xff] %vm324_vm1, %v323_v61  }
  0x9b   :  { %v345_v62 = vpop.permute.xlu0 %344  }
  0x9c   :  { %347 = vst.msk [vmem:[%s737_s1] sm:$0xff] %vm346_vm2, %v345_v62  }

// kernel: double_conv.5
= control target key start
LH: loop header
LB: loop body
LE: loop exit
PB: predicated region body
PF: predicated region fallthrough
CT: control target
= control target key end

     0   :  { %s301_s12 = smov 0   ;;  %s318_s0 = inlined_call_operand.vmem [shape: f32[2,16,128], index: 0, kind: input, shape index: {}]   ;;  %s319_s1 = inlined_call_operand.vmem [shape: f32[1,128], index: 1, kind: input, shape index: {}]   ;;  %s320_s2 = inlined_call_operand.vmem [shape: f32[1,128], index: 2, kind: input, shape index: {}]   ;;  %s321_s3 = inlined_call_operand.vmem [shape: f32[2,16,128], index: 3, kind: output, shape index: {}]  }
   0x1 LB: > { %s250_s13 = sadd.s32 4294967295, %s279_s12   ;;  %p254_p0 = scmp.ge.s32.totalorder %s279_s12, 1  ;;  %s279_s12 = sphi %s301_s12, %s13_s12  }
   0x2   : > { %p137_p1 = scmp.lt.s32.totalorder %s279_s12, 3 }
   0x4   : > { %p138_p2 = pnand %p254_p0, %p137_p1 }
   0x5   : > { %p161_p3 = scmp.lt.s32.totalorder (!%p138_p2), %s250_s13, 1 }
   0x6   : > { %141 = sbr.rel (%p138_p2) target bundleno = 22 (0x16), region = 32 }
   0xb   : > { %s323_s13 = smov (!%p161_p3, %s250_s13), 1  ;;  %v259_v0 = vld [vmem:[%s319_s1] ss:$0 sm:$0xff] }
   0xc   : > { %s263_s14 = sshll.u32 %s323_s13, 4  ;;  %v260_v3 = vld [vmem:[%s320_s2] ss:$0 sm:$0xff] }
   0xd   : > { %s165_s19 = scalar_lea.vmem %s318_s0, %s263_s14  ;;  %s170_s24 = scalar_lea.vmem %s321_s3, %s263_s14 }
   0xe   : > { %v171_v1 = vld [vmem:[%s165_s19] sm:$0xff]  ;;  %v172_v2 = vld [vmem:[%s165_s19 + $0x8] sm:$0xff] }
   0xf   : > { %v180_v4 = vmul.f32 %v259_v0, %v171_v1  ;;  %v181_v5 = vmul.f32 %v259_v0, %v172_v2 }
  0x11   : > { %v189_v6 = vadd.f32 %v260_v3, %v180_v4  ;;  %v190_v7 = vadd.f32 %v260_v3, %v181_v5 }
  0x13   : > { %v191_v8 = vmax.f32 %v189_v6, 0.0  ;;  %v192_v9 = vmax.f32 %v190_v7, 0.0 }
  0x15   : > { %193 = vst [vmem:[%s170_s24] sm:$0xff] %v191_v8  ;;  %194 = vst [vmem:[%s170_s24 + $0x8] sm:$0xff] %v192_v9 }
  0x16 PF: > { %s13_s12 = sadd.s32 1, %s279_s12  }
  0x17   : > { %p10_p4 = scmp.ge.s32.totalorder %s13_s12, 4  }
  0x19   :  { %12 = sbr.rel (!%p10_p4) target bundleno = 1 (0x1), region = 62 }

// kernel: double_conv.3
= control target key start
LH: loop header
LB: loop body
LE: loop exit
PB: predicated region body
PF: predicated region fallthrough
CT: control target
= control target key end

     0   :  { %s1214_s21 = smov 0   ;;  %s1487_s0 = inlined_call_operand.vmem [shape: f32[2,16,64], index: 0, kind: input, shape index: {}]   ;;  %s1488_s1 = inlined_call_operand.vmem [shape: f32[3,64,128], index: 1, kind: input, shape index: {}]   ;;  %s1489_s2 = inlined_call_operand.vmem [shape: f32[128,8], index: 2, kind: input, shape index: {}]   ;;  %s1490_s3 = inlined_call_operand.vmem [shape: f32[8,128], index: 3, kind: input, shape index: {}]   ;;  %s1491_s4 = inlined_call_operand.vmem [shape: f32[2,16,128], index: 4, kind: output, shape index: {0}]   ;;  %s1492_s5 = inlined_call_operand.vmem [shape: f32[2,1,8], index: 5, kind: output, shape index: {1}]   ;;  %s1493_s6 = inlined_call_operand.vmem [shape: f32[2,1,8], index: 6, kind: output, shape index: {2}]  }
   0x1 LB: > { %s925_s22 = sadd.s32 4294967295, %s1175_s21   ;;  %p929_p0 = scmp.ge.s32.totalorder %s1175_s21, 1  ;;  %s1175_s21 = sphi %s1214_s21, %s17_s21  }
   0x2   : > { %p217_p1 = scmp.lt.s32.totalorder %s1175_s21, 3 }
   0x4   : > { %p218_p2 = pnand %p929_p0, %p217_p1 }
   0x5   : > { %p253_p3 = scmp.lt.s32.totalorder (!%p218_p2), %s925_s22, 1 }
   0x6   : > { %221 = sbr.rel (%p218_p2) target bundleno = 860 (0x35c), region = 36 }
   0xb   : > { %v941_v0 = vld [vmem:[%s1488_s1 + $0x78] sm:$0xff]  ;;  %v940_v1 = vld [vmem:[%s1488_s1 + $0x70] sm:$0xff]  ;;  %v939_v2 = vld [vmem:[%s1488_s1 + $0x68] sm:$0xff]  ;;  %s1495_s22 = smov (!%p253_p3, %s925_s22), 1  ;;  %vm273_vm0 = vcmask 1040384   ;;  %vm300_vm1 = vcmask 1046528  }
   0xc   : > { %1027 = vmatprep.subr.mxu1 %v941_v0  ;;  %v953_v3 = vld [vmem:[%s1488_s1 + $0xb8] sm:$0xff]  ;;  %v952_v4 = vld [vmem:[%s1488_s1 + $0xb0] sm:$0xff]  ;;  %v938_v5 = vld [vmem:[%s1488_s1 + $0x60] sm:$0xff]  ;;  %s959_s11 = sshll.u32 %s1495_s22, 4  ;;  %vm306_vm2 = vcmask 523264   ;;  %vm474_vm3 = vcmask 1045504   ;;  %s268_s7 = scalar_lea.vmem %s1493_s6, %s1495_s22 }
   0xd   : > { %1028 = vmatpush3.msra.mxu1 %v941_v0  ;;  %1065 = vmatprep.subr.mxu0 %v953_v3  ;;  %s257_s14 = scalar_lea.vmem %s1487_s0, %s959_s11  ;;  %v951_v6 = vld [vmem:[%s1488_s1 + $0xa8] sm:$0xff]  ;;  %v937_v7 = vld [vmem:[%s1488_s1 + $0x58] sm:$0xff]  ;;  %v950_v12 = vld [vmem:[%s1488_s1 + $0xa0] sm:$0xff]  ;;  %v1177_v42 = vmov 0.0   ;;  %vm1178_vm4 = vmmov 0   ;;  %s262_s26 = scalar_lea.vmem %s1491_s4, %s959_s11  ;;  %vm817_vm5 = vcmask 57344  }
   0xe   : > { %1029 = vmatprep.subr.mxu1 %v940_v1  ;;  %1066 = vmatpush3.msra.mxu0 %v953_v3  ;;  %v269_v8 = vld [vmem:[%s257_s14] sm:$0xff]  ;;  %v270_v9 = vld [vmem:[%s257_s14 + $0x8] sm:$0xff]  ;;  %v936_v13 = vld [vmem:[%s1488_s1 + $0x50] sm:$0xff]  ;;  %s265_s11 = scalar_lea.vmem %s1492_s5, %s1495_s22  ;;  %vm658_vm6 = vcmask 64512  }
   0xf   : > { %1030 = vmatpush3.msra.mxu1 %v940_v1  ;;  %1067 = vmatprep.subr.mxu0 %v952_v4  ;;  %v274_v10 = vrot.slane %v269_v8, 7  ;;  %v275_v11 = vrot.slane %v270_v9, 7  ;;  %v949_v17 = vld [vmem:[%s1488_s1 + $0x98] sm:$0xff]  ;;  %v935_v18 = vld [vmem:[%s1488_s1 + $0x48] sm:$0xff]  ;;  %v934_v22 = vld [vmem:[%s1488_s1 + $0x40] sm:$0xff] }
  0x10   : > { %1031 = vmatprep.subr.mxu1 %v939_v2  ;;  %1068 = vmatpush3.msra.mxu0 %v952_v4  ;;  %v948_v24 = vld [vmem:[%s1488_s1 + $0x90] sm:$0xff]  ;;  %v288_v26 = vld [vmem:[%s1488_s1 + $0x38] sm:$0xff]  ;;  %v947_v27 = vld [vmem:[%s1488_s1 + $0x88] sm:$0xff] }
  0x11   : > { %1032 = vmatpush3.msra.mxu1 %v939_v2  ;;  %1069 = vmatprep.subr.mxu0 %v951_v6  ;;  %v1260_v14 = vsel %vm273_vm0, %v274_v10, %v275_v11  ;;  %v279_v15 = vsel %vm273_vm0, 0.0, %v274_v10  ;;  %v280_v16 = vsel %vm273_vm0, %v275_v11, 0.0  ;;  %v287_v28 = vld [vmem:[%s1488_s1 + $0x30] sm:$0xff]  ;;  %v946_v31 = vld [vmem:[%s1488_s1 + $0x80] sm:$0xff]  ;;  %v286_v33 = vld [vmem:[%s1488_s1 + $0x28] sm:$0xff] }
  0x12   : > { %1033 = vmatprep.subr.mxu1 %v938_v5  ;;  %1070 = vmatpush3.msra.mxu0 %v951_v6  ;;  %v301_v19 = vrot.slane %v279_v15, 1  ;;  %v302_v20 = vrot.slane %v1260_v14, 1  ;;  %v304_v21 = vrot.slane %v280_v16, 1  ;;  %v475_v29 = vrot.slane %v279_v15, 2  ;;  %v285_v34 = vld [vmem:[%s1488_s1 + $0x20] sm:$0xff]  ;;  %v284_v37 = vld [vmem:[%s1488_s1 + $0x18] sm:$0xff] }
  0x13   : > { %1034 = vmatpush3.msra.mxu1 %v938_v5  ;;  %1071 = vmatprep.subr.mxu0 %v950_v12  ;;  %v476_v30 = vrot.slane %v1260_v14, 2  ;;  %v478_v32 = vrot.slane %v280_v16, 2  ;;  %v283_v38 = vld [vmem:[%s1488_s1 + $0x10] sm:$0xff]  ;;  %v282_v39 = vld [vmem:[%s1488_s1 + $0x8] sm:$0xff]  ;;  %v281_v40 = vld [vmem:[%s1488_s1] sm:$0xff] }
  0x14   : > { %1035 = vmatprep.subr.mxu1 %v937_v7  ;;  %1072 = vmatpush3.msra.mxu0 %v950_v12  ;;  %v303_v23 = vsel %vm300_vm1, %v301_v19, %v302_v20  ;;  %v305_v25 = vsel %vm300_vm1, %v302_v20, %v304_v21  ;;  %v1318_v41 = vld [vmem:[%s1489_s2 + $0x78] sm:$0xff]  ;;  %v1324_v43 = vld [vmem:[%s1489_s2 + $0x70] sm:$0xff]  ;;  %v1332_v44 = vld [vmem:[%s1489_s2 + $0x68] sm:$0xff] }
  0x15   : > { %1036 = vmatpush3.msra.mxu1 %v937_v7  ;;  %1073 = vmatprep.subr.mxu0 %v949_v17  ;;  %v477_v35 = vsel %vm474_vm3, %v475_v29, %v476_v30  ;;  %v479_v36 = vsel %vm474_vm3, %v476_v30, %v478_v32  ;;  %v1339_v45 = vld [vmem:[%s1489_s2 + $0x60] sm:$0xff]  ;;  %v1346_v46 = vld [vmem:[%s1489_s2 + $0x58] sm:$0xff]  ;;  %v1355_v47 = vld [vmem:[%s1489_s2 + $0x50] sm:$0xff] }
  0x16   : > { %1037 = vmatprep.subr.mxu1 %v936_v13  ;;  %1043 = vmatprep.mubr.msk.f32.mxu1 %vm306_vm2, %v303_v23  ;;  %v1362_v48 = vld [vmem:[%s1489_s2 + $0x48] sm:$0xff]  ;;  %v1369_v49 = vld [vmem:[%s1489_s2 + $0x40] sm:$0xff]  ;;  %v1376_v50 = vld [vmem:[%s1489_s2 + $0x38] sm:$0xff] }
  0x17   : > { %1038 = vmatpush3.msra.mxu1 %v936_v13  ;;  %1074 = vmatpush3.msra.mxu0 %v949_v17  ;;  %v1383_v51 = vld [vmem:[%s1489_s2 + $0x30] sm:$0xff]  ;;  %v1390_v52 = vld [vmem:[%s1489_s2 + $0x28] sm:$0xff]  ;;  %v1397_v53 = vld [vmem:[%s1489_s2 + $0x20] sm:$0xff] }
  0x18   : > { %1039 = vmatprep.subr.mxu1 %v935_v18  ;;  %1075 = vmatprep.subr.mxu0 %v948_v24  ;;  %v1404_v54 = vld [vmem:[%s1489_s2 + $0x18] sm:$0xff]  ;;  %v1411_v55 = vld [vmem:[%s1489_s2 + $0x10] sm:$0xff]  ;;  %v1416_v56 = vld [vmem:[%s1489_s2 + $0x8] sm:$0xff] }
  0x19   : > { %1040 = vmatpush3.msra.mxu1 %v935_v18  ;;  %1076 = vmatpush3.msra.mxu0 %v948_v24  ;;  %v1425_v57 = vld [vmem:[%s1489_s2] sm:$0xff] }
  0x1a   : > { %1041 = vmatprep.subr.mxu1 %v934_v22  ;;  %1077 = vmatprep.subr.mxu0 %v947_v27  ;;  %v579_v58 = vld [vmem:[%s1490_s3] sm:$0xff] }
  0x1b   : > { %1042 = vmatpush3.msra.mxu1 %v934_v22  ;;  %1078 = vmatpush3.msra.mxu0 %v947_v27 }
  0x1c   : > { %1044 = vmatmul.mubr.msk.f32.vlgmr.msra.gmra.mxu1 %vm306_vm2, %v305_v25  ;;  %1046 = vmatprep.subr.mxu1 %v288_v26 }
  0x1d   : > { %1047 = vmatpush3.msra.mxu1 %v288_v26  ;;  %1079 = vmatprep.subr.mxu0 %v946_v31 }
  0x1e   : > { %1048 = vmatprep.subr.mxu1 %v287_v28  ;;  %1062 = vmatprep.mubr.msk.f32.mxu1 %vm306_vm2, %v279_v15  ;;  %v732_v15 = vlaneseq }
  0x1f   : > { %1049 = vmatpush3.msra.mxu1 %v287_v28  ;;  %1080 = vmatpush3.msra.mxu0 %v946_v31 }
  0x20   : > { %1050 = vmatprep.subr.mxu1 %v286_v33  ;;  %1081 = vmatprep.mubr.msk.f32.mxu0 %vm306_vm2, %v477_v35  ;;  %v733_v16 = vshrl.u32 %v732_v15, 7 }
  0x21   : > { %1051 = vmatpush3.msra.mxu1 %v286_v33  ;;  %1082 = vmatmul.mubr.msk.f32.vlgmr.msra.gmra.mxu0 %vm306_vm2, %v479_v36 }
  0x22   : > { %1052 = vmatprep.subr.mxu1 %v285_v34  ;;  %1119 = vmatprep.subr.mxu0 %v1177_v42  ;;  %v734_v17 = vsub.s32 0, %v733_v16 }
  0x23   : > { %1053 = vmatpush3.msra.mxu1 %v285_v34  ;;  %1121 = vmatprep.mubr.msk.f32.mxu0 %vm1178_vm4, %v1177_v42 }
  0x24   : > { %1054 = vmatprep.subr.mxu1 %v284_v37  ;;  %1120 = vmatpush3.msra.mxu0 %v579_v58 }
  0x25   : > { %1055 = vmatpush3.msra.mxu1 %v284_v37  ;;  %1124 = vmatprep.subr.mxu0 %v1177_v42 }
  0x26   : > { %1056 = vmatprep.subr.mxu1 %v283_v38 }
  0x27   : > { %1057 = vmatpush3.msra.mxu1 %v283_v38 }
  0x28   : > { %1058 = vmatprep.subr.mxu1 %v282_v39 }
  0x29   : > { %1059 = vmatpush3.msra.mxu1 %v282_v39 }
  0x2a   : > { %1060 = vmatprep.subr.mxu1 %v281_v40 }
  0x2b   : > { %1061 = vmatpush3.msra.mxu1 %v281_v40 }
  0x2c   : > { %1063 = vmatmul.mubr.msk.f32.vlgmr.msra.gmra.mxu1 %vm306_vm2, %v1260_v14  ;;  %1084 = vmatprep.subr.mxu1 %v1177_v42 }
  0x2d   : > { %1085 = vmatpush3.msra.mxu1 %v1318_v41  ;;  %1116 = vmatprep.mubr.msk.f32.mxu1 %vm1178_vm4, %v1177_v42 }
  0x2e   : > { %1086 = vmatprep.subr.mxu1 %v1177_v42 }
  0x2f   : > { %1087 = vmatpush3.msra.mxu1 %v1324_v43 }
  0x30   : > { %1088 = vmatprep.subr.mxu1 %v1177_v42 }
  0x31   : > { %1089 = vmatpush3.msra.mxu1 %v1332_v44 }
  0x32   : > { %1090 = vmatprep.subr.mxu1 %v1177_v42 }
  0x33   : > { %1091 = vmatpush3.msra.mxu1 %v1339_v45 }
  0x34   : > { %1092 = vmatprep.subr.mxu1 %v1177_v42 }
  0x35   : > { %1093 = vmatpush3.msra.mxu1 %v1346_v46 }
  0x36   : > { %1094 = vmatprep.subr.mxu1 %v1177_v42 }
  0x37   : > { %1095 = vmatpush3.msra.mxu1 %v1355_v47 }
  0x38   : > { %1096 = vmatprep.subr.mxu1 %v1177_v42 }
  0x39   : > { %1097 = vmatpush3.msra.mxu1 %v1362_v48 }
  0x3a   : > { %1098 = vmatprep.subr.mxu1 %v1177_v42 }
  0x3b   : > { %1099 = vmatpush3.msra.mxu1 %v1369_v49 }
  0x3c   : > { %1100 = vmatprep.subr.mxu1 %v1177_v42 }
  0x3d   : > { %1101 = vmatpush3.msra.mxu1 %v1376_v50 }
  0x3e   : > { %1102 = vmatprep.subr.mxu1 %v1177_v42 }
  0x3f   : > { %1103 = vmatpush3.msra.mxu1 %v1383_v51 }
  0x40   : > { %1104 = vmatprep.subr.mxu1 %v1177_v42 }
  0x41   : > { %1105 = vmatpush3.msra.mxu1 %v1390_v52 }
  0x42   : > { %1106 = vmatprep.subr.mxu1 %v1177_v42 }
  0x43   : > { %1107 = vmatpush3.msra.mxu1 %v1397_v53 }
  0x44   : > { %1108 = vmatprep.subr.mxu1 %v1177_v42 }
  0x45   : > { %1109 = vmatpush3.msra.mxu1 %v1404_v54 }
  0x46   : > { %1110 = vmatprep.subr.mxu1 %v1177_v42 }
  0x47   : > { %1111 = vmatpush3.msra.mxu1 %v1411_v55 }
  0x48   : > { %1112 = vmatprep.subr.mxu1 %v1177_v42 }
  0x49   : > { %1113 = vmatpush3.msra.mxu1 %v1416_v56 }
  0x4a   : > { %1114 = vmatprep.subr.mxu1 %v1177_v42 }
  0x4b   : > { %1115 = vmatpush3.msra.mxu1 %v1425_v57 }
  0xdc   : > { %v1045_v59 = vpop.f32.mrf.mxu1 }
  0xde   : > { %v377_v60 = vpop.f32.mrf.mxu1 }
  0xe1   : > { %v1083_v62 = vpop.f32.mrf.mxu0 }
  0xe3   : > { %v550_v3 = vpop.f32.mrf.mxu0 }
  0xec   : > { %v1064_v61 = vpop.f32.mrf.mxu1 }
  0xed   : > { %v462_v63 = vadd.f32 %v1064_v61, %v1045_v59 }
  0xee   : > { %v456_v0 = vpop.f32.mrf.mxu1 }
  0xef   : > { %v560_v1 = vadd.f32 %v1083_v62, %v462_v63  ;;  %v457_v2 = vadd.f32 %v456_v0, %v377_v60 }
  0xf1   : > { %562 = vst [vmem:[%s262_s26 + $0x8] sm:$0xff] %v560_v1  ;;  %v559_v4 = vadd.f32 %v550_v3, %v457_v2 }
  0xf3   : > { %561 = vst [vmem:[%s262_s26] sm:$0xff] %v559_v4  ;;  %v580_v5 = vadd.f32 %v560_v1, %v559_v4 }
  0xf5   : > { %v581_v6 = vrot.slane %v580_v5, 4 }
  0xf7   : > { %v582_v7 = vadd.f32 %v581_v6, %v580_v5 }
  0xf9   : > { %v583_v8 = vrot.slane %v582_v7, 2 }
  0xfb   : > { %v584_v9 = vadd.f32 %v583_v8, %v582_v7 }
  0xfd   : > { %v585_v10 = vrot.slane %v584_v9, 1 }
  0xff   : > { %v586_v11 = vadd.f32 %v585_v10, %v584_v9 }
 0x101   : > { %1117 = vmatmul.mubr.f32.vlgmr.msra.gmra.mxu1 %v586_v11 }
 0x1c1   : > { %v653_v12 = vpop.f32.mrf.mxu1 }
 0x1c2   : > { %v657_v13 = vmul.f32 0.00390625, %v653_v12  ;;  %818 = vst.msk [vmem:[%s265_s11] sm:$0x1] %vm817_vm5, %v653_v12 }
 0x1c3   : > { %v1118_v14 = vpop.f32.mrf.mxu1 }
 0x1c4   : > { %1122 = vmatmul.mubr.msk.f32.vlgmr.msra.gmra.mxu0 %vm658_vm6, %v657_v13 }
 0x1c5   : > { %1125 = vmatpush3.msra.mxu0 %v1318_v41  ;;  %1156 = vmatprep.mubr.msk.f32.mxu0 %vm1178_vm4, %v1177_v42 }
 0x1c6   : > { %1126 = vmatprep.subr.mxu0 %v1177_v42 }
 0x1c7   : > { %1127 = vmatpush3.msra.mxu0 %v1324_v43 }
 0x1c8   : > { %1128 = vmatprep.subr.mxu0 %v1177_v42 }
 0x1c9   : > { %1129 = vmatpush3.msra.mxu0 %v1332_v44 }
 0x1ca   : > { %1130 = vmatprep.subr.mxu0 %v1177_v42 }
 0x1cb   : > { %1131 = vmatpush3.msra.mxu0 %v1339_v45 }
 0x1cc   : > { %1132 = vmatprep.subr.mxu0 %v1177_v42 }
 0x1cd   : > { %1133 = vmatpush3.msra.mxu0 %v1346_v46 }
 0x1ce   : > { %1134 = vmatprep.subr.mxu0 %v1177_v42 }
 0x1cf   : > { %1135 = vmatpush3.msra.mxu0 %v1355_v47 }
 0x1d0   : > { %1136 = vmatprep.subr.mxu0 %v1177_v42 }
 0x1d1   : > { %1137 = vmatpush3.msra.mxu0 %v1362_v48 }
 0x1d2   : > { %1138 = vmatprep.subr.mxu0 %v1177_v42 }
 0x1d3   : > { %1139 = vmatpush3.msra.mxu0 %v1369_v49 }
 0x1d4   : > { %1140 = vmatprep.subr.mxu0 %v1177_v42 }
 0x1d5   : > { %1141 = vmatpush3.msra.mxu0 %v1376_v50 }
 0x1d6   : > { %1142 = vmatprep.subr.mxu0 %v1177_v42 }
 0x1d7   : > { %1143 = vmatpush3.msra.mxu0 %v1383_v51 }
 0x1d8   : > { %1144 = vmatprep.subr.mxu0 %v1177_v42 }
 0x1d9   : > { %1145 = vmatpush3.msra.mxu0 %v1390_v52 }
 0x1da   : > { %1146 = vmatprep.subr.mxu0 %v1177_v42 }
 0x1db   : > { %1147 = vmatpush3.msra.mxu0 %v1397_v53 }
 0x1dc   : > { %1148 = vmatprep.subr.mxu0 %v1177_v42 }
 0x1dd   : > { %1149 = vmatpush3.msra.mxu0 %v1404_v54 }
 0x1de   : > { %1150 = vmatprep.subr.mxu0 %v1177_v42 }
 0x1df   : > { %1151 = vmatpush3.msra.mxu0 %v1411_v55 }
 0x1e0   : > { %1152 = vmatprep.subr.mxu0 %v1177_v42 }
 0x1e1   : > { %1153 = vmatpush3.msra.mxu0 %v1416_v56 }
 0x1e2   : > { %1154 = vmatprep.subr.mxu0 %v1177_v42 }
 0x1e3   : > { %1155 = vmatpush3.msra.mxu0 %v1425_v57 }
 0x284   : > { %v728_v18 = vpop.f32.mrf.mxu0 }
 0x285   : > { %v735_v19 = vrot.slane %v728_v18, %v734_v17 }
 0x286   : > { %v1123_v20 = vpop.f32.mrf.mxu0 }
 0x287   : > { %v736_v21 = vsub.f32 %v559_v4, %v735_v19  ;;  %v737_v22 = vsub.f32 %v560_v1, %v735_v19 }
 0x289   : > { %v738_v23 = vmul.f32 %v736_v21, %v736_v21  ;;  %v739_v24 = vmul.f32 %v737_v22, %v737_v22 }
 0x28b   : > { %v740_v25 = vadd.f32 %v739_v24, %v738_v23 }
 0x28d   : > { %v741_v26 = vrot.slane %v740_v25, 4 }
 0x28f   : > { %v742_v27 = vadd.f32 %v741_v26, %v740_v25 }
 0x291   : > { %v743_v28 = vrot.slane %v742_v27, 2 }
 0x293   : > { %v744_v29 = vadd.f32 %v743_v28, %v742_v27 }
 0x295   : > { %v745_v30 = vrot.slane %v744_v29, 1 }
 0x297   : > { %v746_v31 = vadd.f32 %v745_v30, %v744_v29 }
 0x299   : > { %1157 = vmatmul.mubr.f32.vlgmr.msra.gmra.mxu0 %v746_v31 }
 0x359   : > { %v813_v32 = vpop.f32.mrf.mxu0 }
 0x35a   : > { %819 = vst.msk [vmem:[%s268_s7] sm:$0x1] %vm817_vm5, %v813_v32 }
 0x35b   : > { %v1158_v33 = vpop.f32.mrf.mxu0 }
 0x35c PF: > { %s17_s21 = sadd.s32 1, %s1175_s21  }
 0x35d   : > { %p14_p4 = scmp.ge.s32.totalorder %s17_s21, 4  }
 0x35f   :  { %16 = sbr.rel (!%p14_p4) target bundleno = 1 (0x1), region = 92 }

// kernel: double_conv.4
= control target key start
LH: loop header
LB: loop body
LE: loop exit
PB: predicated region body
PF: predicated region fallthrough
CT: control target
= control target key end

     0   :  { %s1400_s27 = smov 0   ;;  %s1743_s0 = inlined_call_operand.vmem [shape: f32[2,16,128], index: 0, kind: input, shape index: {}]   ;;  %s1744_s1 = inlined_call_operand.vmem [shape: f32[1,128], index: 1, kind: input, shape index: {}]   ;;  %s1745_s2 = inlined_call_operand.vmem [shape: f32[1,128], index: 2, kind: input, shape index: {}]   ;;  %s1746_s3 = inlined_call_operand.vmem [shape: f32[3,128,128], index: 3, kind: input, shape index: {}]   ;;  %s1747_s4 = inlined_call_operand.vmem [shape: f32[128,8], index: 4, kind: input, shape index: {}]   ;;  %s1748_s5 = inlined_call_operand.vmem [shape: f32[8,128], index: 5, kind: input, shape index: {}]   ;;  %s1749_s6 = inlined_call_operand.vmem [shape: f32[2,16,128], index: 6, kind: output, shape index: {0}]   ;;  %s1750_s7 = inlined_call_operand.vmem [shape: f32[2,1,8], index: 7, kind: output, shape index: {1}]   ;;  %s1751_s8 = inlined_call_operand.vmem [shape: f32[2,1,8], index: 8, kind: output, shape index: {2}]  }
   0x1 LB: > { %s1015_s28 = sadd.s32 4294967295, %s1351_s27   ;;  %p1019_p0 = scmp.ge.s32.totalorder %s1351_s27, 1  ;;  %s1351_s27 = sphi %s1400_s27, %s19_s27  }
   0x2   : > { %p267_p1 = scmp.lt.s32.totalorder %s1351_s27, 3 }
   0x4   : > { %p268_p2 = pnand %p1019_p0, %p267_p1 }
   0x5   : > { %p307_p3 = scmp.lt.s32.totalorder (!%p268_p2), %s1015_s28, 1 }
   0x6   : > { %271 = sbr.rel (%p268_p2) target bundleno = 892 (0x37c), region = 44 }
   0xb   : > { %v1041_v0 = vld [vmem:[%s1746_s3 + $0xf8] sm:$0xff]  ;;  %v1040_v2 = vld [vmem:[%s1746_s3 + $0xf0] sm:$0xff]  ;;  %v1039_v4 = vld [vmem:[%s1746_s3 + $0xe8] sm:$0xff]  ;;  %s1753_s28 = smov (!%p307_p3, %s1015_s28), 1  ;;  %vm347_vm0 = vcmask 1040384   ;;  %vm391_vm1 = vcmask 1046528  }
   0xc   : > { %v371_v1 = vld [vmem:[%s1746_s3 + $0x78] sm:$0xff]  ;;  %1155 = vmatprep.subr.mxu0 %v1041_v0  ;;  %v370_v3 = vld [vmem:[%s1746_s3 + $0x70] sm:$0xff]  ;;  %v369_v5 = vld [vmem:[%s1746_s3 + $0x68] sm:$0xff]  ;;  %s1063_s23 = sshll.u32 %s1753_s28, 4  ;;  %vm566_vm2 = vcmask 1045504   ;;  %vm1354_vm4 = vmmov 0   ;;  %s319_s15 = scalar_lea.vmem %s1750_s7, %s1753_s28 }
   0xd   : > { %1190 = vmatprep.subr.mxu1 %v371_v1  ;;  %1156 = vmatpush3.msra.mxu0 %v1041_v0  ;;  %v1038_v6 = vld [vmem:[%s1746_s3 + $0xe0] sm:$0xff]  ;;  %v1037_v8 = vld [vmem:[%s1746_s3 + $0xd8] sm:$0xff]  ;;  %s311_s10 = scalar_lea.vmem %s1743_s0, %s1063_s23  ;;  %v1036_v10 = vld [vmem:[%s1746_s3 + $0xd0] sm:$0xff]  ;;  %s316_s13 = scalar_lea.vmem %s1749_s6, %s1063_s23  ;;  %vm907_vm5 = vcmask 57344   ;;  %vm748_vm6 = vcmask 64512  }
   0xe   : > { %1191 = vmatpush3.msra.mxu1 %v371_v1  ;;  %1157 = vmatprep.subr.mxu0 %v1040_v2  ;;  %v368_v7 = vld [vmem:[%s1746_s3 + $0x60] sm:$0xff]  ;;  %v367_v9 = vld [vmem:[%s1746_s3 + $0x58] sm:$0xff]  ;;  %v366_v11 = vld [vmem:[%s1746_s3 + $0x50] sm:$0xff]  ;;  %s322_s18 = scalar_lea.vmem %s1751_s8, %s1753_s28 }
   0xf   : > { %1192 = vmatprep.subr.mxu1 %v370_v3  ;;  %1158 = vmatpush3.msra.mxu0 %v1040_v2  ;;  %v1035_v12 = vld [vmem:[%s1746_s3 + $0xc8] sm:$0xff]  ;;  %v323_v14 = vld [vmem:[%s311_s10] sm:$0xff]  ;;  %v1033_v22 = vld [vmem:[%s1746_s3 + $0xb8] sm:$0xff] }
  0x10   : > { %1193 = vmatpush3.msra.mxu1 %v370_v3  ;;  %1159 = vmatprep.subr.mxu0 %v1039_v4  ;;  %v365_v13 = vld [vmem:[%s1746_s3 + $0x48] sm:$0xff]  ;;  %v1024_v16 = vld [vmem:[%s1744_s1] ss:$0 sm:$0xff]  ;;  %v363_v23 = vld [vmem:[%s1746_s3 + $0x38] sm:$0xff] }
  0x11   : > { %1194 = vmatprep.subr.mxu1 %v369_v5  ;;  %1160 = vmatpush3.msra.mxu0 %v1039_v4  ;;  %v324_v15 = vld [vmem:[%s311_s10 + $0x8] sm:$0xff]  ;;  %v1025_v17 = vld [vmem:[%s1745_s2] ss:$0 sm:$0xff]  ;;  %v332_v20 = vmul.f32 %v1024_v16, %v323_v14  ;;  %v1032_v26 = vld [vmem:[%s1746_s3 + $0xb0] sm:$0xff] }
  0x12   : > { %1195 = vmatpush3.msra.mxu1 %v369_v5  ;;  %1161 = vmatprep.subr.mxu0 %v1038_v6  ;;  %v1034_v18 = vld [vmem:[%s1746_s3 + $0xc0] sm:$0xff]  ;;  %v333_v21 = vmul.f32 %v1024_v16, %v324_v15  ;;  %v362_v27 = vld [vmem:[%s1746_s3 + $0x30] sm:$0xff]  ;;  %v1031_v30 = vld [vmem:[%s1746_s3 + $0xa8] sm:$0xff] }
  0x13   : > { %1196 = vmatprep.subr.mxu1 %v368_v7  ;;  %1162 = vmatpush3.msra.mxu0 %v1038_v6  ;;  %v364_v19 = vld [vmem:[%s1746_s3 + $0x40] sm:$0xff]  ;;  %v341_v24 = vadd.f32 %v1025_v17, %v332_v20  ;;  %v361_v31 = vld [vmem:[%s1746_s3 + $0x28] sm:$0xff]  ;;  %v1029_v36 = vld [vmem:[%s1746_s3 + $0x98] sm:$0xff] }
  0x14   : > { %1197 = vmatpush3.msra.mxu1 %v368_v7  ;;  %1163 = vmatprep.subr.mxu0 %v1037_v8  ;;  %v342_v25 = vadd.f32 %v1025_v17, %v333_v21  ;;  %v1030_v34 = vld [vmem:[%s1746_s3 + $0xa0] sm:$0xff]  ;;  %v359_v37 = vld [vmem:[%s1746_s3 + $0x18] sm:$0xff]  ;;  %v1028_v40 = vld [vmem:[%s1746_s3 + $0x90] sm:$0xff] }
  0x15   : > { %1198 = vmatprep.subr.mxu1 %v367_v9  ;;  %1164 = vmatpush3.msra.mxu0 %v1037_v8  ;;  %v343_v28 = vmax.f32 %v341_v24, 0.0  ;;  %v360_v35 = vld [vmem:[%s1746_s3 + $0x20] sm:$0xff]  ;;  %v358_v41 = vld [vmem:[%s1746_s3 + $0x10] sm:$0xff]  ;;  %v1027_v45 = vld [vmem:[%s1746_s3 + $0x88] sm:$0xff] }
  0x16   : > { %1199 = vmatpush3.msra.mxu1 %v367_v9  ;;  %1165 = vmatprep.subr.mxu0 %v1036_v10  ;;  %v344_v29 = vmax.f32 %v342_v25, 0.0  ;;  %v357_v46 = vld [vmem:[%s1746_s3 + $0x8] sm:$0xff]  ;;  %v1026_v48 = vld [vmem:[%s1746_s3 + $0x80] sm:$0xff]  ;;  %vm1042_vm3 = vmneg %vm347_vm0 }
  0x17   : > { %1200 = vmatprep.subr.mxu1 %v366_v11  ;;  %1166 = vmatpush3.msra.mxu0 %v1036_v10  ;;  %v348_v32 = vrot.slane %v343_v28, 7  ;;  %v356_v49 = vld [vmem:[%s1746_s3] sm:$0xff]  ;;  %v1059_v54 = vld [vmem:[%s1746_s3 + $0x178] sm:$0xff]  ;;  %v1058_v56 = vld [vmem:[%s1746_s3 + $0x170] sm:$0xff]  ;;  %v1353_v10 = vmov 0.0  }
  0x18   : > { %1201 = vmatpush3.msra.mxu1 %v366_v11  ;;  %1167 = vmatprep.subr.mxu0 %v1035_v12  ;;  %v349_v33 = vrot.slane %v344_v29, 7  ;;  %v1057_v57 = vld [vmem:[%s1746_s3 + $0x168] sm:$0xff]  ;;  %v1056_v58 = vld [vmem:[%s1746_s3 + $0x160] sm:$0xff]  ;;  %v1055_v59 = vld [vmem:[%s1746_s3 + $0x158] sm:$0xff] }
  0x19   : > { %1202 = vmatprep.subr.mxu1 %v365_v13  ;;  %1168 = vmatpush3.msra.mxu0 %v1035_v12  ;;  %v354_v39 = vsel %vm347_vm0, 0.0, %v348_v32  ;;  %v1054_v60 = vld [vmem:[%s1746_s3 + $0x150] sm:$0xff]  ;;  %v1053_v61 = vld [vmem:[%s1746_s3 + $0x148] sm:$0xff]  ;;  %v1052_v62 = vld [vmem:[%s1746_s3 + $0x140] sm:$0xff] }
  0x1a   : > { %1203 = vmatpush3.msra.mxu1 %v365_v13  ;;  %1169 = vmatprep.subr.mxu0 %v1034_v18  ;;  %v1501_v38 = vsel %vm347_vm0, %v348_v32, %v349_v33  ;;  %v1511_v42 = vsel %vm347_vm0, %v349_v33, 0.0  ;;  %v392_v43 = vrot.slane %v354_v39, 1  ;;  %v567_v50 = vrot.slane %v354_v39, 2  ;;  %v1051_v63 = vld [vmem:[%s1746_s3 + $0x138] sm:$0xff]  ;;  %v1050_v0 = vld [vmem:[%s1746_s3 + $0x130] sm:$0xff]  ;;  %v1049_v1 = vld [vmem:[%s1746_s3 + $0x128] sm:$0xff] }
  0x1b   : > { %1204 = vmatprep.subr.mxu1 %v364_v19  ;;  %1170 = vmatpush3.msra.mxu0 %v1034_v18  ;;  %v393_v44 = vrot.slane %v1501_v38, 1  ;;  %v395_v47 = vrot.slane %v1511_v42, 1  ;;  %v568_v51 = vrot.slane %v1501_v38, 2  ;;  %v1048_v2 = vld [vmem:[%s1746_s3 + $0x120] sm:$0xff]  ;;  %v1047_v3 = vld [vmem:[%s1746_s3 + $0x118] sm:$0xff]  ;;  %v1046_v4 = vld [vmem:[%s1746_s3 + $0x110] sm:$0xff] }
  0x1c   : > { %1205 = vmatpush3.msra.mxu1 %v364_v19  ;;  %1171 = vmatprep.subr.mxu0 %v1033_v22  ;;  %v1045_v5 = vld [vmem:[%s1746_s3 + $0x108] sm:$0xff]  ;;  %v570_v6 = vrot.slane %v1511_v42, 2  ;;  %v1044_v7 = vld [vmem:[%s1746_s3 + $0x100] sm:$0xff]  ;;  %v1590_v9 = vld [vmem:[%s1747_s4 + $0x78] sm:$0xff] }
  0x1d   : > { %1206 = vmatprep.subr.mxu1 %v363_v23  ;;  %1172 = vmatpush3.msra.mxu0 %v1033_v22  ;;  %v394_v52 = vsel %vm391_vm1, %v392_v43, %v393_v44  ;;  %v396_v53 = vsel %vm391_vm1, %v393_v44, %v395_v47  ;;  %v569_v55 = vsel %vm566_vm2, %v567_v50, %v568_v51  ;;  %v1596_v11 = vld [vmem:[%s1747_s4 + $0x70] sm:$0xff]  ;;  %v1604_v12 = vld [vmem:[%s1747_s4 + $0x68] sm:$0xff]  ;;  %v1611_v13 = vld [vmem:[%s1747_s4 + $0x60] sm:$0xff]  ;;  %v822_v47 = vlaneseq }
  0x1e   : > { %1207 = vmatpush3.msra.mxu1 %v363_v23  ;;  %1173 = vmatprep.subr.mxu0 %v1032_v26  ;;  %v571_v8 = vsel %vm566_vm2, %v568_v51, %v570_v6  ;;  %v1618_v14 = vld [vmem:[%s1747_s4 + $0x58] sm:$0xff]  ;;  %v1625_v15 = vld [vmem:[%s1747_s4 + $0x50] sm:$0xff]  ;;  %v1634_v16 = vld [vmem:[%s1747_s4 + $0x48] sm:$0xff] }
  0x1f   : > { %1208 = vmatprep.subr.mxu1 %v362_v27  ;;  %1174 = vmatpush3.msra.mxu0 %v1032_v26  ;;  %v1641_v17 = vld [vmem:[%s1747_s4 + $0x40] sm:$0xff]  ;;  %v1648_v18 = vld [vmem:[%s1747_s4 + $0x38] sm:$0xff]  ;;  %v1655_v19 = vld [vmem:[%s1747_s4 + $0x30] sm:$0xff] }
  0x20   : > { %1209 = vmatpush3.msra.mxu1 %v362_v27  ;;  %1175 = vmatprep.subr.mxu0 %v1031_v30  ;;  %v1662_v20 = vld [vmem:[%s1747_s4 + $0x28] sm:$0xff]  ;;  %v1669_v21 = vld [vmem:[%s1747_s4 + $0x20] sm:$0xff]  ;;  %v656_v22 = vld [vmem:[%s1747_s4 + $0x18] sm:$0xff] }
  0x21   : > { %1210 = vmatprep.subr.mxu1 %v361_v31  ;;  %1176 = vmatpush3.msra.mxu0 %v1031_v30  ;;  %v655_v23 = vld [vmem:[%s1747_s4 + $0x10] sm:$0xff]  ;;  %v654_v24 = vld [vmem:[%s1747_s4 + $0x8] sm:$0xff]  ;;  %v653_v25 = vld [vmem:[%s1747_s4] sm:$0xff] }
  0x22   : > { %1211 = vmatpush3.msra.mxu1 %v361_v31  ;;  %1177 = vmatprep.subr.mxu0 %v1030_v34  ;;  %v669_v26 = vld [vmem:[%s1748_s5] sm:$0xff] }
  0x23   : > { %1212 = vmatprep.subr.mxu1 %v360_v35  ;;  %1178 = vmatpush3.msra.mxu0 %v1030_v34 }
  0x24   : > { %1213 = vmatpush3.msra.mxu1 %v360_v35  ;;  %1179 = vmatprep.subr.mxu0 %v1029_v36 }
  0x25   : > { %1214 = vmatprep.subr.mxu1 %v359_v37  ;;  %1180 = vmatpush3.msra.mxu0 %v1029_v36 }
  0x26   : > { %1215 = vmatpush3.msra.mxu1 %v359_v37  ;;  %1181 = vmatprep.subr.mxu0 %v1028_v40 }
  0x27   : > { %1216 = vmatprep.subr.mxu1 %v358_v41  ;;  %1182 = vmatpush3.msra.mxu0 %v1028_v40 }
  0x28   : > { %1217 = vmatpush3.msra.mxu1 %v358_v41  ;;  %1183 = vmatprep.subr.mxu0 %v1027_v45 }
  0x29   : > { %1218 = vmatprep.subr.mxu1 %v357_v46  ;;  %1184 = vmatpush3.msra.mxu0 %v1027_v45 }
  0x2a   : > { %1219 = vmatpush3.msra.mxu1 %v357_v46  ;;  %1185 = vmatprep.subr.mxu0 %v1026_v48 }
  0x2b   : > { %1220 = vmatprep.subr.mxu1 %v356_v49  ;;  %1186 = vmatpush3.msra.mxu0 %v1026_v48  ;;  %v823_v48 = vshrl.u32 %v822_v47, 7 }
  0x2c   : > { %1187 = vmatprep.mubr.f32.mxu0 %v394_v52  ;;  %1221 = vmatpush3.msra.mxu1 %v356_v49 }
  0x2d   : > { %1222 = vmatprep.mubr.msk.f32.mxu1 %vm1042_vm3, %v348_v32  ;;  %1188 = vmatmul.mubr.f32.vlgmr.msra.gmra.mxu0 %v396_v53  ;;  %v824_v49 = vsub.s32 0, %v823_v48 }
  0x2e   : > { %1223 = vmatmul.mubr.f32.vlgmr.msra.gmra.mxu1 %v1501_v38  ;;  %1225 = vmatprep.subr.mxu0 %v1059_v54 }
  0x2f   : > { %1257 = vmatprep.mubr.f32.mxu0 %v569_v55  ;;  %1226 = vmatpush3.msra.mxu0 %v1059_v54 }
  0x30   : > { %1227 = vmatprep.subr.mxu0 %v1058_v56  ;;  %1260 = vmatprep.subr.mxu1 %v1353_v10 }
  0x31   : > { %1228 = vmatpush3.msra.mxu0 %v1058_v56  ;;  %1261 = vmatpush3.msra.mxu1 %v1590_v9 }
  0x32   : > { %1229 = vmatprep.subr.mxu0 %v1057_v57  ;;  %1262 = vmatprep.subr.mxu1 %v1353_v10 }
  0x33   : > { %1230 = vmatpush3.msra.mxu0 %v1057_v57  ;;  %1263 = vmatpush3.msra.mxu1 %v1596_v11 }
  0x34   : > { %1231 = vmatprep.subr.mxu0 %v1056_v58  ;;  %1264 = vmatprep.subr.mxu1 %v1353_v10 }
  0x35   : > { %1232 = vmatpush3.msra.mxu0 %v1056_v58  ;;  %1265 = vmatpush3.msra.mxu1 %v1604_v12 }
  0x36   : > { %1233 = vmatprep.subr.mxu0 %v1055_v59  ;;  %1266 = vmatprep.subr.mxu1 %v1353_v10 }
  0x37   : > { %1234 = vmatpush3.msra.mxu0 %v1055_v59  ;;  %1267 = vmatpush3.msra.mxu1 %v1611_v13 }
  0x38   : > { %1235 = vmatprep.subr.mxu0 %v1054_v60  ;;  %1268 = vmatprep.subr.mxu1 %v1353_v10 }
  0x39   : > { %1236 = vmatpush3.msra.mxu0 %v1054_v60  ;;  %1269 = vmatpush3.msra.mxu1 %v1618_v14 }
  0x3a   : > { %1237 = vmatprep.subr.mxu0 %v1053_v61  ;;  %1270 = vmatprep.subr.mxu1 %v1353_v10 }
  0x3b   : > { %1238 = vmatpush3.msra.mxu0 %v1053_v61  ;;  %1271 = vmatpush3.msra.mxu1 %v1625_v15 }
  0x3c   : > { %1239 = vmatprep.subr.mxu0 %v1052_v62  ;;  %1272 = vmatprep.subr.mxu1 %v1353_v10 }
  0x3d   : > { %1240 = vmatpush3.msra.mxu0 %v1052_v62  ;;  %1273 = vmatpush3.msra.mxu1 %v1634_v16 }
  0x3e   : > { %1241 = vmatprep.subr.mxu0 %v1051_v63  ;;  %1274 = vmatprep.subr.mxu1 %v1353_v10 }
  0x3f   : > { %1242 = vmatpush3.msra.mxu0 %v1051_v63  ;;  %1275 = vmatpush3.msra.mxu1 %v1641_v17 }
  0x40   : > { %1243 = vmatprep.subr.mxu0 %v1050_v0  ;;  %1276 = vmatprep.subr.mxu1 %v1353_v10 }
  0x41   : > { %1244 = vmatpush3.msra.mxu0 %v1050_v0  ;;  %1277 = vmatpush3.msra.mxu1 %v1648_v18 }
  0x42   : > { %1245 = vmatprep.subr.mxu0 %v1049_v1  ;;  %1278 = vmatprep.subr.mxu1 %v1353_v10 }
  0x43   : > { %1246 = vmatpush3.msra.mxu0 %v1049_v1  ;;  %1279 = vmatpush3.msra.mxu1 %v1655_v19 }
  0x44   : > { %1247 = vmatprep.subr.mxu0 %v1048_v2  ;;  %1280 = vmatprep.subr.mxu1 %v1353_v10 }
  0x45   : > { %1248 = vmatpush3.msra.mxu0 %v1048_v2  ;;  %1281 = vmatpush3.msra.mxu1 %v1662_v20 }
  0x46   : > { %1249 = vmatprep.subr.mxu0 %v1047_v3  ;;  %1282 = vmatprep.subr.mxu1 %v1353_v10 }
  0x47   : > { %1250 = vmatpush3.msra.mxu0 %v1047_v3  ;;  %1283 = vmatpush3.msra.mxu1 %v1669_v21 }
  0x48   : > { %1251 = vmatprep.subr.mxu0 %v1046_v4  ;;  %1284 = vmatprep.subr.mxu1 %v1353_v10 }
  0x49   : > { %1252 = vmatpush3.msra.mxu0 %v1046_v4  ;;  %1285 = vmatpush3.msra.mxu1 %v656_v22 }
  0x4a   : > { %1253 = vmatprep.subr.mxu0 %v1045_v5  ;;  %1286 = vmatprep.subr.mxu1 %v1353_v10 }
  0x4b   : > { %1254 = vmatpush3.msra.mxu0 %v1045_v5  ;;  %1287 = vmatpush3.msra.mxu1 %v655_v23 }
  0x4c   : > { %1255 = vmatprep.subr.mxu0 %v1044_v7  ;;  %1292 = vmatprep.mubr.msk.f32.mxu1 %vm1354_vm4, %v1353_v10 }
  0x4d   : > { %1256 = vmatpush3.msra.mxu0 %v1044_v7  ;;  %1288 = vmatprep.subr.mxu1 %v1353_v10 }
  0x4e   : > { %1258 = vmatmul.mubr.f32.vlgmr.msra.gmra.mxu0 %v571_v8  ;;  %1295 = vmatprep.subr.mxu0 %v1353_v10 }
  0x4f   : > { %1297 = vmatprep.mubr.msk.f32.mxu0 %vm1354_vm4, %v1353_v10  ;;  %1289 = vmatpush3.msra.mxu1 %v654_v24 }
  0x50   : > { %1290 = vmatprep.subr.mxu1 %v1353_v10  ;;  %1296 = vmatpush3.msra.mxu0 %v669_v26 }
  0x51   : > { %1291 = vmatpush3.msra.mxu1 %v653_v25 }
  0x52   : > { %1300 = vmatprep.subr.mxu1 %v1353_v10 }
  0xed   : > { %v1189_v27 = vpop.f32.mrf.mxu0 }
  0xee   : > { %v1224_v28 = vpop.f32.mrf.mxu1 }
  0xef   : > { %v465_v29 = vpop.f32.mrf.mxu0  ;;  %v546_v31 = vadd.f32 %v1224_v28, %v1189_v27 }
  0xf0   : > { %v540_v30 = vpop.f32.mrf.mxu1 }
  0xf1   : > { %v541_v33 = vadd.f32 %v540_v30, %v465_v29 }
 0x10e   : > { %v1259_v32 = vpop.f32.mrf.mxu0 }
 0x10f   : > { %v650_v34 = vadd.f32 %v1259_v32, %v546_v31 }
 0x110   : > { %v640_v35 = vpop.f32.mrf.mxu0 }
 0x111   : > { %652 = vst [vmem:[%s316_s13 + $0x8] sm:$0xff] %v650_v34  ;;  %v649_v36 = vadd.f32 %v640_v35, %v541_v33 }
 0x113   : > { %651 = vst [vmem:[%s316_s13] sm:$0xff] %v649_v36  ;;  %v670_v37 = vadd.f32 %v650_v34, %v649_v36 }
 0x115   : > { %v671_v38 = vrot.slane %v670_v37, 4 }
 0x117   : > { %v672_v39 = vadd.f32 %v671_v38, %v670_v37 }
 0x119   : > { %v673_v40 = vrot.slane %v672_v39, 2 }
 0x11b   : > { %v674_v41 = vadd.f32 %v673_v40, %v672_v39 }
 0x11d   : > { %v675_v42 = vrot.slane %v674_v41, 1 }
 0x11f   : > { %v676_v43 = vadd.f32 %v675_v42, %v674_v41 }
 0x121   : > { %1293 = vmatmul.mubr.f32.vlgmr.msra.gmra.mxu1 %v676_v43 }
 0x122   : > { %1301 = vmatpush3.msra.mxu1 %v1590_v9  ;;  %1332 = vmatprep.mubr.msk.f32.mxu1 %vm1354_vm4, %v1353_v10 }
 0x123   : > { %1302 = vmatprep.subr.mxu1 %v1353_v10 }
 0x124   : > { %1303 = vmatpush3.msra.mxu1 %v1596_v11 }
 0x125   : > { %1304 = vmatprep.subr.mxu1 %v1353_v10 }
 0x126   : > { %1305 = vmatpush3.msra.mxu1 %v1604_v12 }
 0x127   : > { %1306 = vmatprep.subr.mxu1 %v1353_v10 }
 0x128   : > { %1307 = vmatpush3.msra.mxu1 %v1611_v13 }
 0x129   : > { %1308 = vmatprep.subr.mxu1 %v1353_v10 }
 0x12a   : > { %1309 = vmatpush3.msra.mxu1 %v1618_v14 }
 0x12b   : > { %1310 = vmatprep.subr.mxu1 %v1353_v10 }
 0x12c   : > { %1311 = vmatpush3.msra.mxu1 %v1625_v15 }
 0x12d   : > { %1312 = vmatprep.subr.mxu1 %v1353_v10 }
 0x12e   : > { %1313 = vmatpush3.msra.mxu1 %v1634_v16 }
 0x12f   : > { %1314 = vmatprep.subr.mxu1 %v1353_v10 }
 0x130   : > { %1315 = vmatpush3.msra.mxu1 %v1641_v17 }
 0x131   : > { %1316 = vmatprep.subr.mxu1 %v1353_v10 }
 0x132   : > { %1317 = vmatpush3.msra.mxu1 %v1648_v18 }
 0x133   : > { %1318 = vmatprep.subr.mxu1 %v1353_v10 }
 0x134   : > { %1319 = vmatpush3.msra.mxu1 %v1655_v19 }
 0x135   : > { %1320 = vmatprep.subr.mxu1 %v1353_v10 }
 0x136   : > { %1321 = vmatpush3.msra.mxu1 %v1662_v20 }
 0x137   : > { %1322 = vmatprep.subr.mxu1 %v1353_v10 }
 0x138   : > { %1323 = vmatpush3.msra.mxu1 %v1669_v21 }
 0x139   : > { %1324 = vmatprep.subr.mxu1 %v1353_v10 }
 0x13a   : > { %1325 = vmatpush3.msra.mxu1 %v656_v22 }
 0x13b   : > { %1326 = vmatprep.subr.mxu1 %v1353_v10 }
 0x13c   : > { %1327 = vmatpush3.msra.mxu1 %v655_v23 }
 0x13d   : > { %1328 = vmatprep.subr.mxu1 %v1353_v10 }
 0x13e   : > { %1329 = vmatpush3.msra.mxu1 %v654_v24 }
 0x13f   : > { %1330 = vmatprep.subr.mxu1 %v1353_v10 }
 0x140   : > { %1331 = vmatpush3.msra.mxu1 %v653_v25 }
 0x1e1   : > { %v743_v44 = vpop.f32.mrf.mxu1 }
 0x1e2   : > { %v747_v45 = vmul.f32 0.00390625, %v743_v44  ;;  %908 = vst.msk [vmem:[%s319_s15] sm:$0x1] %vm907_vm5, %v743_v44 }
 0x1e3   : > { %v1294_v46 = vpop.f32.mrf.mxu1 }
 0x1e4   : > { %1298 = vmatmul.mubr.msk.f32.vlgmr.msra.gmra.mxu0 %vm748_vm6, %v747_v45 }
 0x2a4   : > { %v818_v50 = vpop.f32.mrf.mxu0 }
 0x2a5   : > { %v825_v51 = vrot.slane %v818_v50, %v824_v49 }
 0x2a6   : > { %v1299_v52 = vpop.f32.mrf.mxu0 }
 0x2a7   : > { %v826_v53 = vsub.f32 %v649_v36, %v825_v51  ;;  %v827_v54 = vsub.f32 %v650_v34, %v825_v51 }
 0x2a9   : > { %v828_v55 = vmul.f32 %v826_v53, %v826_v53  ;;  %v829_v56 = vmul.f32 %v827_v54, %v827_v54 }
 0x2ab   : > { %v830_v57 = vadd.f32 %v829_v56, %v828_v55 }
 0x2ad   : > { %v831_v58 = vrot.slane %v830_v57, 4 }
 0x2af   : > { %v832_v59 = vadd.f32 %v831_v58, %v830_v57 }
 0x2b1   : > { %v833_v60 = vrot.slane %v832_v59, 2 }
 0x2b3   : > { %v834_v61 = vadd.f32 %v833_v60, %v832_v59 }
 0x2b5   : > { %v835_v62 = vrot.slane %v834_v61, 1 }
 0x2b7   : > { %v836_v63 = vadd.f32 %v835_v62, %v834_v61 }
 0x2b9   : > { %1333 = vmatmul.mubr.f32.vlgmr.msra.gmra.mxu1 %v836_v63 }
 0x379   : > { %v903_v0 = vpop.f32.mrf.mxu1 }
 0x37a   : > { %909 = vst.msk [vmem:[%s322_s18] sm:$0x1] %vm907_vm5, %v903_v0 }
 0x37b   : > { %v1334_v1 = vpop.f32.mrf.mxu1 }
 0x37c PF: > { %s19_s27 = sadd.s32 1, %s1351_s27  }
 0x37d   : > { %p16_p4 = scmp.ge.s32.totalorder %s19_s27, 4  }
 0x37f   :  { %18 = sbr.rel (!%p16_p4) target bundleno = 1 (0x1), region = 100 }

</bundles_post_ra>
